<compile_context>
chip_gen: v7x
topology: tpu7x:2x2x1
jax: 0.10.0
libtpu: 0.0.40
codegen_flags: <defaults>
</compile_context>

<pallas_src>
import functools
import math

import jax
import jax.numpy as jnp
from jax.experimental import pallas as pl
from jax.experimental.pallas import tpu as pltpu


# -----------------------------------------------------------------------------
# Kernel
# -----------------------------------------------------------------------------
def decoder_layer_kernel(
    # activations / masks
    x_ref, y_ref, smask_ref, cmask_ref,
    # self-attention params
    wqkv1_ref, bqkv1_ref, wo1_ref, bo1_ref,
    # cross-attention params
    wq2_ref, bq2_ref, wkv2_ref, bkv2_ref, wo2_ref, bo2_ref,
    # feed-forward params
    wf1_ref, bf1_ref, wf2_ref, bf2_ref,
    # layernorm params (stacked [ln1, ln2, ln3])
    lng_ref, lnb_ref,
    # output
    o_ref,
    *, num_heads, head_dim, scale, eps):
  H, hd = num_heads, head_dim
  x = x_ref[0]                  # (S, D) encoder output (cross-attn K/V source)
  y = y_ref[0]                  # (S, D) decoder input
  S, D = y.shape
  dt = y.dtype                  # model dtype -> MXU operand dtype (bf16-ready)

  def layer_norm(v, i):
    # v: (S, D) f32.  Matches LayerNormalization: biased var, sqrt(var + eps).
    mean = jnp.mean(v, axis=-1, keepdims=True)
    cent = v - mean
    var = jnp.mean(cent * cent, axis=-1, keepdims=True)
    inv = jax.lax.rsqrt(var + eps)
    return lng_ref[i] * (cent * inv) + lnb_ref[i]

  def mha(q_in, kv_in, wq, bq, wk, bk, wv, bv, wo, bo, mask):
    # Heads live on a leading batch dim; all head math is batched einsums.
    qb = jnp.broadcast_to(q_in.astype(dt), (H, S, D))
    kb = jnp.broadcast_to(kv_in.astype(dt), (H, S, D))
    # Per-head projections (f32 accumulation on the MXU).
    qh = jnp.einsum('hsd,hde->hse', qb, wq.astype(dt),
                    preferred_element_type=jnp.float32) + bq
    kh = jnp.einsum('hsd,hde->hse', kb, wk.astype(dt),
                    preferred_element_type=jnp.float32) + bk
    vh = jnp.einsum('hsd,hde->hse', kb, wv.astype(dt),
                    preferred_element_type=jnp.float32) + bv
    # Scores + softmax (softmax math in f32; MXU operands in model dtype).
    s = jnp.einsum('hqe,hke->hqk', qh.astype(dt), kh.astype(dt),
                   preferred_element_type=jnp.float32) * scale
    s = s + mask[None]                       # additive mask, broadcast over heads
    m = jnp.max(s, axis=-1, keepdims=True)
    e = jnp.exp(s - m)
    denom = jnp.sum(e, axis=-1, keepdims=True)
    p = e * pl.reciprocal(denom, approx=True)        # EUP reciprocal, frees VPU
    vals = jnp.einsum('hqk,hke->hqe', p.astype(dt), vh.astype(dt),
                      preferred_element_type=jnp.float32)        # (H, S, hd)
    # Merge heads + output projection: sum_h vals[h] @ W_out[h]   (no concat)
    outh = jnp.einsum('hse,hed->hsd', vals.astype(dt), wo.astype(dt),
                      preferred_element_type=jnp.float32)        # (H, S, D)
    return jnp.sum(outh, axis=0) + bo                            # (S, D) f32

  # ---- stage 1: self-attention on y, residual, LayerNorm1 ----
  y0 = y.astype(jnp.float32)
  sa = mha(y, y,
           wqkv1_ref[0], bqkv1_ref[0],
           wqkv1_ref[1], bqkv1_ref[1],
           wqkv1_ref[2], bqkv1_ref[2],
           wo1_ref[...], bo1_ref[...], smask_ref[...])
  y1 = layer_norm(sa + y0, 0)

  # ---- stage 2: cross-attention (q from y1, k/v from x), residual, LayerNorm2 ----
  ca = mha(y1, x,
           wq2_ref[...], bq2_ref[...],
           wkv2_ref[0], bkv2_ref[0],
           wkv2_ref[1], bkv2_ref[1],
           wo2_ref[...], bo2_ref[...], cmask_ref[...])
  y2 = layer_norm(ca + y1, 1)

  # ---- stage 3: position-wise FFN, residual, LayerNorm3 ----
  h = jnp.dot(y2.astype(dt), wf1_ref[...].astype(dt),
              preferred_element_type=jnp.float32) + bf1_ref[...]
  h = jnp.maximum(h, 0.0)
  ff = jnp.dot(h.astype(dt), wf2_ref[...].astype(dt),
               preferred_element_type=jnp.float32) + bf2_ref[...]
  y3 = layer_norm(ff + y2, 2)

  o_ref[0] = y3.astype(o_ref.dtype)


# -----------------------------------------------------------------------------
# Wrapper
# -----------------------------------------------------------------------------
def decoder_layer(x, y, self_mask, cross_mask, params, num_heads):
  """Fused DecoderLayer forward.

  Weights follow the JAX convention out = in @ W + b (W = W_torch.T), with the
  qkv / kv column layouts matching the module's reshape(B, S, H, {3,2}*hd)
  per-head chunking. Masks are additive (S, S) and broadcast over batch and
  heads (same as the permute(1,0,2,3)+mask trick in scaled_dot_product).
  """
  B, S, D = y.shape
  H = num_heads
  hd = D // H
  F = params["w_f1"].shape[1]

  # Host-side one-time re-layout into head-batched slabs (so the kernel never
  # does interleaved lane slicing / transposes).
  # self-attention qkv columns: j = h*3*hd + c*hd + e, c in {q,k,v}
  wqkv1 = jnp.transpose(params["w_qkv"].reshape(D, H, 3, hd), (2, 1, 0, 3))      # (3,H,D,hd)
  bqkv1 = jnp.transpose(params["b_qkv"].reshape(H, 3, hd), (1, 0, 2)).reshape(3, H, 1, hd)
  wo1 = params["w_out1"].reshape(H, hd, D)                                       # rows j = h*hd+e
  bo1 = params["b_out1"].reshape(1, D)
  # cross-attention: kv columns j = h*2*hd + c*hd + e (c in {k,v}); q columns j = h*hd+e
  wq2 = jnp.transpose(params["w_q2"].reshape(D, H, hd), (1, 0, 2))               # (H,D,hd)
  bq2 = params["b_q2"].reshape(H, 1, hd)
  wkv2 = jnp.transpose(params["w_kv"].reshape(D, H, 2, hd), (2, 1, 0, 3))        # (2,H,D,hd)
  bkv2 = jnp.transpose(params["b_kv"].reshape(H, 2, hd), (1, 0, 2)).reshape(2, H, 1, hd)
  wo2 = params["w_out2"].reshape(H, hd, D)
  bo2 = params["b_out2"].reshape(1, D)
  # ffn
  wf1, bf1 = params["w_f1"], params["b_f1"].reshape(1, F)
  wf2, bf2 = params["w_f2"], params["b_f2"].reshape(1, D)
  # layernorms, stacked [ln1, ln2, ln3]
  lng = jnp.stack([params["ln1_g"], params["ln2_g"], params["ln3_g"]]).reshape(3, 1, D)
  lnb = jnp.stack([params["ln1_b"], params["ln2_b"], params["ln3_b"]]).reshape(3, 1, D)

  kernel = functools.partial(decoder_layer_kernel, num_heads=H, head_dim=hd,
                             scale=1.0 / math.sqrt(hd), eps=1e-5)

  def rep(shape):  # replicated operand (weights / masks): one block = whole array
    return pl.BlockSpec(shape, lambda *_: (0,) * len(shape))

  return pl.pallas_call(
      kernel,
      out_shape=jax.ShapeDtypeStruct((B, S, D), y.dtype),
      grid_spec=pltpu.PrefetchScalarGridSpec(
          num_scalar_prefetch=0,
          grid=(B,),
          in_specs=[
              pl.BlockSpec((1, S, D), lambda b: (b, 0, 0)),   # x (encoder out)
              pl.BlockSpec((1, S, D), lambda b: (b, 0, 0)),   # y (decoder in)
              rep((S, S)),                                    # self-attention mask
              rep((S, S)),                                    # cross-attention mask
              rep((3, H, D, hd)), rep((3, H, 1, hd)),         # W_qkv / b_qkv   (self)
              rep((H, hd, D)), rep((1, D)),                   # W_out1 / b_out1
              rep((H, D, hd)), rep((H, 1, hd)),               # W_q / b_q       (cross)
              rep((2, H, D, hd)), rep((2, H, 1, hd)),         # W_kv / b_kv     (cross)
              rep((H, hd, D)), rep((1, D)),                   # W_out2 / b_out2
              rep((D, F)), rep((1, F)),                       # W_ffn1 / b_ffn1
              rep((F, D)), rep((1, D)),                       # W_ffn2 / b_ffn2
              rep((3, 1, D)), rep((3, 1, D)),                 # LN gamma / beta (x3)
          ],
          out_specs=pl.BlockSpec((1, S, D), lambda b: (b, 0, 0)),
      ),
      compiler_params=pltpu.CompilerParams(
          dimension_semantics=("parallel",)),
  )(x, y, self_mask, cross_mask,
    wqkv1, bqkv1, wo1, bo1,
    wq2, bq2, wkv2, bkv2, wo2, bo2,
    wf1, bf1, wf2, bf2,
    lng, lnb)


# -----------------------------------------------------------------------------
# Pure-JAX reference matching the PyTorch module literally
# -----------------------------------------------------------------------------
def _ref_sdp(q, k, v, mask):
  d_k = q.shape[-1]
  scaled = jnp.einsum('bhqe,bhke->bhqk', q, k) / math.sqrt(d_k)
  if mask is not None:
    scaled = jnp.transpose(scaled, (1, 0, 2, 3)) + mask
    scaled = jnp.transpose(scaled, (1, 0, 2, 3))
  attn = jax.nn.softmax(scaled, axis=-1)
  return jnp.einsum('bhqk,bhke->bhqe', attn, v)


def _ref_ln(v, g, b, eps=1e-5):
  mean = v.mean(-1, keepdims=True)
  var = ((v - mean) ** 2).mean(-1, keepdims=True)
  return g * (v - mean) / jnp.sqrt(var + eps) + b


def ref_decoder_layer(x, y, self_mask, cross_mask, p, H):
  B, S, D = y.shape
  hd = D // H
  # self-attention
  _y = y
  qkv = y @ p["w_qkv"] + p["b_qkv"]
  qkv = qkv.reshape(B, S, H, 3 * hd).transpose(0, 2, 1, 3)
  q, k, v = jnp.split(qkv, 3, axis=-1)
  vals = _ref_sdp(q, k, v, self_mask).transpose(0, 2, 1, 3).reshape(B, S, D)
  yy = vals @ p["w_out1"] + p["b_out1"]
  yy = _ref_ln(yy + _y, p["ln1_g"], p["ln1_b"])
  # cross-attention (k/v from x, q from yy)
  _y = yy
  kv = x @ p["w_kv"] + p["b_kv"]
  q = yy @ p["w_q2"] + p["b_q2"]
  kv = kv.reshape(B, S, H, 2 * hd).transpose(0, 2, 1, 3)
  q = q.reshape(B, S, H, hd).transpose(0, 2, 1, 3)
  k, v = jnp.split(kv, 2, axis=-1)
  vals = _ref_sdp(q, k, v, cross_mask).transpose(0, 2, 1, 3).reshape(B, S, D)
  yy = vals @ p["w_out2"] + p["b_out2"]
  yy = _ref_ln(yy + _y, p["ln2_g"], p["ln2_b"])
  # ffn
  _y = yy
  h = jnp.maximum(yy @ p["w_f1"] + p["b_f1"], 0.0)
  yy = h @ p["w_f2"] + p["b_f2"]
  yy = _ref_ln(yy + _y, p["ln3_g"], p["ln3_b"])
  return yy


# -----------------------------------------------------------------------------
# Demo / self-test
# -----------------------------------------------------------------------------
if __name__ == "__main__":
  B, S, D, H, F = 2, 8, 32, 4, 64   # small shapes consistent with the module
  hd = D // H

  key = jax.random.PRNGKey(0)
  keys = jax.random.split(key, 20)

  def uniform(k, shape, fan_in):
    bound = 1.0 / math.sqrt(fan_in)
    return jax.random.uniform(k, shape, jnp.float32, -bound, bound)

  x = jax.random.normal(keys[0], (B, S, D), jnp.float32)   # encoder output
  y = jax.random.normal(keys[1], (B, S, D), jnp.float32)   # decoder input

  params = dict(
      w_qkv=uniform(keys[2], (D, 3 * D), D), b_qkv=uniform(keys[3], (3 * D,), D),
      w_out1=uniform(keys[4], (D, D), D),    b_out1=uniform(keys[5], (D,), D),
      ln1_g=1.0 + 0.1 * jax.random.normal(keys[6], (D,), jnp.float32),
      ln1_b=0.1 * jax.random.normal(keys[7], (D,), jnp.float32),
      w_kv=uniform(keys[8], (D, 2 * D), D),  b_kv=uniform(keys[9], (2 * D,), D),
      w_q2=uniform(keys[10], (D, D), D),     b_q2=uniform(keys[11], (D,), D),
      w_out2=uniform(keys[12], (D, D), D),   b_out2=uniform(keys[13], (D,), D),
      ln2_g=1.0 + 0.1 * jax.random.normal(keys[14], (D,), jnp.float32),
      ln2_b=0.1 * jax.random.normal(keys[15], (D,), jnp.float32),
      w_f1=uniform(keys[16], (D, F), D),     b_f1=uniform(keys[17], (F,), D),
      w_f2=uniform(keys[18], (F, D), F),     b_f2=uniform(keys[19], (D,), F),
      ln3_g=jnp.ones((D,), jnp.float32),     ln3_b=jnp.zeros((D,), jnp.float32),
  )

  neg = -1e9
  self_mask = jnp.where(jnp.tril(jnp.ones((S, S), jnp.bool_)), 0.0, neg
                        ).astype(jnp.float32)                       # causal
  cross_mask = jnp.zeros((S, S), jnp.float32).at[:, S - 2:].set(neg)  # pad-style

  out = decoder_layer(x, y, self_mask, cross_mask, params, H)
  out = jax.block_until_ready(out)

  ref = ref_decoder_layer(x, y, self_mask, cross_mask, params, H)
  assert out.shape == (B, S, D)
  max_err = float(jnp.max(jnp.abs(out - ref)))
  assert jnp.allclose(out, ref, atol=2e-2, rtol=2e-2), (
      f"mismatch vs reference: max|diff|={max_err}")

  print("KERNEL_OK")
</pallas_src>

<mosaic_0001>
module attributes {stable_mosaic.version = 11 : i64} {
  func.func @decoder_layer_kernel(%arg0: i32, %arg1: memref<1x8x32xf32, #tpu.memory_space<vmem>>, %arg2: memref<1x8x32xf32, #tpu.memory_space<vmem>>, %arg3: memref<8x8xf32, #tpu.memory_space<vmem>>, %arg4: memref<8x8xf32, #tpu.memory_space<vmem>>, %arg5: memref<3x4x32x8xf32, #tpu.memory_space<vmem>>, %arg6: memref<3x4x1x8xf32, #tpu.memory_space<vmem>>, %arg7: memref<4x8x32xf32, #tpu.memory_space<vmem>>, %arg8: memref<1x32xf32, #tpu.memory_space<vmem>>, %arg9: memref<4x32x8xf32, #tpu.memory_space<vmem>>, %arg10: memref<4x1x8xf32, #tpu.memory_space<vmem>>, %arg11: memref<2x4x32x8xf32, #tpu.memory_space<vmem>>, %arg12: memref<2x4x1x8xf32, #tpu.memory_space<vmem>>, %arg13: memref<4x8x32xf32, #tpu.memory_space<vmem>>, %arg14: memref<1x32xf32, #tpu.memory_space<vmem>>, %arg15: memref<32x64xf32, #tpu.memory_space<vmem>>, %arg16: memref<1x64xf32, #tpu.memory_space<vmem>>, %arg17: memref<64x32xf32, #tpu.memory_space<vmem>>, %arg18: memref<1x32xf32, #tpu.memory_space<vmem>>, %arg19: memref<3x1x32xf32, #tpu.memory_space<vmem>>, %arg20: memref<3x1x32xf32, #tpu.memory_space<vmem>>, %arg21: memref<1x8x32xf32, #tpu.memory_space<vmem>>) attributes {dimension_semantics = [#tpu.dimension_semantics<parallel>], iteration_bounds = array<i64: 2>, scalar_prefetch = 0 : i64, scratch_operands = 0 : i64, tpu.core_type = #tpu.core_type<tc>, window_params = [{transform_indices = @transform_0, window_bounds = array<i64: 1, 8, 32>}, {transform_indices = @transform_1, window_bounds = array<i64: 1, 8, 32>}, {pipeline_mode = #tpu.pipeline_mode<synchronous>, transform_indices = @transform_2, window_bounds = array<i64: 8, 8>}, {pipeline_mode = #tpu.pipeline_mode<synchronous>, transform_indices = @transform_3, window_bounds = array<i64: 8, 8>}, {pipeline_mode = #tpu.pipeline_mode<synchronous>, transform_indices = @transform_4, window_bounds = array<i64: 3, 4, 32, 8>}, {pipeline_mode = #tpu.pipeline_mode<synchronous>, transform_indices = @transform_5, window_bounds = array<i64: 3, 4, 1, 8>}, {pipeline_mode = #tpu.pipeline_mode<synchronous>, transform_indices = @transform_6, window_bounds = array<i64: 4, 8, 32>}, {pipeline_mode = #tpu.pipeline_mode<synchronous>, transform_indices = @transform_7, window_bounds = array<i64: 1, 32>}, {pipeline_mode = #tpu.pipeline_mode<synchronous>, transform_indices = @transform_8, window_bounds = array<i64: 4, 32, 8>}, {pipeline_mode = #tpu.pipeline_mode<synchronous>, transform_indices = @transform_9, window_bounds = array<i64: 4, 1, 8>}, {pipeline_mode = #tpu.pipeline_mode<synchronous>, transform_indices = @transform_10, window_bounds = array<i64: 2, 4, 32, 8>}, {pipeline_mode = #tpu.pipeline_mode<synchronous>, transform_indices = @transform_11, window_bounds = array<i64: 2, 4, 1, 8>}, {pipeline_mode = #tpu.pipeline_mode<synchronous>, transform_indices = @transform_12, window_bounds = array<i64: 4, 8, 32>}, {pipeline_mode = #tpu.pipeline_mode<synchronous>, transform_indices = @transform_13, window_bounds = array<i64: 1, 32>}, {pipeline_mode = #tpu.pipeline_mode<synchronous>, transform_indices = @transform_14, window_bounds = array<i64: 32, 64>}, {pipeline_mode = #tpu.pipeline_mode<synchronous>, transform_indices = @transform_15, window_bounds = array<i64: 1, 64>}, {pipeline_mode = #tpu.pipeline_mode<synchronous>, transform_indices = @transform_16, window_bounds = array<i64: 64, 32>}, {pipeline_mode = #tpu.pipeline_mode<synchronous>, transform_indices = @transform_17, window_bounds = array<i64: 1, 32>}, {pipeline_mode = #tpu.pipeline_mode<synchronous>, transform_indices = @transform_18, window_bounds = array<i64: 3, 1, 32>}, {pipeline_mode = #tpu.pipeline_mode<synchronous>, transform_indices = @transform_19, window_bounds = array<i64: 3, 1, 32>}, {transform_indices = @transform_20, window_bounds = array<i64: 1, 8, 32>}]} {
    %c0 = arith.constant 0 : index
    %c0_0 = arith.constant 0 : index
    %c0_1 = arith.constant 0 : index
    %0 = vector.load %arg1[%c0, %c0_0, %c0_1] : memref<1x8x32xf32, #tpu.memory_space<vmem>>, vector<1x8x32xf32>
    %1 = vector.shape_cast %0 : vector<1x8x32xf32> to vector<8x32xf32>
    %c0_2 = arith.constant 0 : index
    %c0_3 = arith.constant 0 : index
    %c0_4 = arith.constant 0 : index
    %2 = vector.load %arg2[%c0_2, %c0_3, %c0_4] : memref<1x8x32xf32, #tpu.memory_space<vmem>>, vector<1x8x32xf32>
    %3 = vector.shape_cast %2 : vector<1x8x32xf32> to vector<8x32xf32>
    %c0_5 = arith.constant 0 : index
    %c0_6 = arith.constant 0 : index
    %c0_7 = arith.constant 0 : index
    %c0_8 = arith.constant 0 : index
    %4 = vector.load %arg5[%c0_5, %c0_6, %c0_7, %c0_8] : memref<3x4x32x8xf32, #tpu.memory_space<vmem>>, vector<1x4x32x8xf32>
    %5 = vector.shape_cast %4 : vector<1x4x32x8xf32> to vector<4x32x8xf32>
    %c0_9 = arith.constant 0 : index
    %c0_10 = arith.constant 0 : index
    %c0_11 = arith.constant 0 : index
    %c0_12 = arith.constant 0 : index
    %6 = vector.load %arg6[%c0_9, %c0_10, %c0_11, %c0_12] : memref<3x4x1x8xf32, #tpu.memory_space<vmem>>, vector<1x4x1x8xf32>
    %7 = vector.shape_cast %6 : vector<1x4x1x8xf32> to vector<4x1x8xf32>
    %c1 = arith.constant 1 : index
    %c0_13 = arith.constant 0 : index
    %c0_14 = arith.constant 0 : index
    %c0_15 = arith.constant 0 : index
    %8 = vector.load %arg5[%c1, %c0_13, %c0_14, %c0_15] : memref<3x4x32x8xf32, #tpu.memory_space<vmem>>, vector<1x4x32x8xf32>
    %9 = vector.shape_cast %8 : vector<1x4x32x8xf32> to vector<4x32x8xf32>
    %c1_16 = arith.constant 1 : index
    %c0_17 = arith.constant 0 : index
    %c0_18 = arith.constant 0 : index
    %c0_19 = arith.constant 0 : index
    %10 = vector.load %arg6[%c1_16, %c0_17, %c0_18, %c0_19] : memref<3x4x1x8xf32, #tpu.memory_space<vmem>>, vector<1x4x1x8xf32>
    %11 = vector.shape_cast %10 : vector<1x4x1x8xf32> to vector<4x1x8xf32>
    %c2 = arith.constant 2 : index
    %c0_20 = arith.constant 0 : index
    %c0_21 = arith.constant 0 : index
    %c0_22 = arith.constant 0 : index
    %12 = vector.load %arg5[%c2, %c0_20, %c0_21, %c0_22] : memref<3x4x32x8xf32, #tpu.memory_space<vmem>>, vector<1x4x32x8xf32>
    %13 = vector.shape_cast %12 : vector<1x4x32x8xf32> to vector<4x32x8xf32>
    %c2_23 = arith.constant 2 : index
    %c0_24 = arith.constant 0 : index
    %c0_25 = arith.constant 0 : index
    %c0_26 = arith.constant 0 : index
    %14 = vector.load %arg6[%c2_23, %c0_24, %c0_25, %c0_26] : memref<3x4x1x8xf32, #tpu.memory_space<vmem>>, vector<1x4x1x8xf32>
    %15 = vector.shape_cast %14 : vector<1x4x1x8xf32> to vector<4x1x8xf32>
    %c0_27 = arith.constant 0 : index
    %c0_28 = arith.constant 0 : index
    %c0_29 = arith.constant 0 : index
    %16 = vector.load %arg7[%c0_27, %c0_28, %c0_29] : memref<4x8x32xf32, #tpu.memory_space<vmem>>, vector<4x8x32xf32>
    %c0_30 = arith.constant 0 : index
    %c0_31 = arith.constant 0 : index
    %17 = vector.load %arg8[%c0_30, %c0_31] : memref<1x32xf32, #tpu.memory_space<vmem>>, vector<1x32xf32>
    %c0_32 = arith.constant 0 : index
    %c0_33 = arith.constant 0 : index
    %18 = vector.load %arg3[%c0_32, %c0_33] : memref<8x8xf32, #tpu.memory_space<vmem>>, vector<8x8xf32>
    %19 = vector.shape_cast %3 : vector<8x32xf32> to vector<1x8x32xf32>
    %20 = vector.broadcast %19 : vector<1x8x32xf32> to vector<4x8x32xf32>
    %21 = vector.shape_cast %3 : vector<8x32xf32> to vector<1x8x32xf32>
    %22 = vector.broadcast %21 : vector<1x8x32xf32> to vector<4x8x32xf32>
    "tpu.trace_start"() <{level = 10 : i32, message = "hsd,hde->hse"}> : () -> ()
    %cst = arith.constant dense<0.000000e+00> : vector<4x8x8xf32>
    %23 = tpu.matmul %20, %5, %cst {dimension_numbers = #tpu.dot_dimension_numbers<[2], [1], [1], [2], [0, 0, 0, 1, 1, 2], [0], [0]>} : vector<4x8x32xf32>, vector<4x32x8xf32>, vector<4x8x8xf32> -> vector<4x8x8xf32>
    "tpu.trace_stop"() : () -> ()
    %24 = vector.broadcast %7 : vector<4x1x8xf32> to vector<4x8x8xf32>
    %25 = arith.addf %23, %24 : vector<4x8x8xf32>
    "tpu.trace_start"() <{level = 10 : i32, message = "hsd,hde->hse"}> : () -> ()
    %cst_34 = arith.constant dense<0.000000e+00> : vector<4x8x8xf32>
    %26 = tpu.matmul %22, %9, %cst_34 {dimension_numbers = #tpu.dot_dimension_numbers<[2], [1], [1], [2], [0, 0, 0, 1, 1, 2], [0], [0]>} : vector<4x8x32xf32>, vector<4x32x8xf32>, vector<4x8x8xf32> -> vector<4x8x8xf32>
    "tpu.trace_stop"() : () -> ()
    %27 = vector.broadcast %11 : vector<4x1x8xf32> to vector<4x8x8xf32>
    %28 = arith.addf %26, %27 : vector<4x8x8xf32>
    "tpu.trace_start"() <{level = 10 : i32, message = "hsd,hde->hse"}> : () -> ()
    %cst_35 = arith.constant dense<0.000000e+00> : vector<4x8x8xf32>
    %29 = tpu.matmul %22, %13, %cst_35 {dimension_numbers = #tpu.dot_dimension_numbers<[2], [1], [1], [2], [0, 0, 0, 1, 1, 2], [0], [0]>} : vector<4x8x32xf32>, vector<4x32x8xf32>, vector<4x8x8xf32> -> vector<4x8x8xf32>
    "tpu.trace_stop"() : () -> ()
    %30 = vector.broadcast %15 : vector<4x1x8xf32> to vector<4x8x8xf32>
    %31 = arith.addf %29, %30 : vector<4x8x8xf32>
    "tpu.trace_start"() <{level = 10 : i32, message = "hqe,hke->hqk"}> : () -> ()
    %cst_36 = arith.constant dense<0.000000e+00> : vector<4x8x8xf32>
    %32 = tpu.matmul %25, %28, %cst_36 {dimension_numbers = #tpu.dot_dimension_numbers<[2], [2], [1], [1], [0, 0, 0, 1, 1, 1], [0], [0]>} : vector<4x8x8xf32>, vector<4x8x8xf32>, vector<4x8x8xf32> -> vector<4x8x8xf32>
    "tpu.trace_stop"() : () -> ()
    %cst_37 = arith.constant 0.353553385 : f32
    %33 = vector.broadcast %cst_37 : f32 to vector<4x8x8xf32>
    %34 = arith.mulf %32, %33 : vector<4x8x8xf32>
    %35 = vector.shape_cast %18 : vector<8x8xf32> to vector<1x8x8xf32>
    %36 = vector.broadcast %35 : vector<1x8x8xf32> to vector<4x8x8xf32>
    %37 = arith.addf %34, %36 : vector<4x8x8xf32>
    %cst_38 = arith.constant dense<0xFF800000> : vector<4x8xf32>
    %38 = vector.multi_reduction <maximumf>, %37, %cst_38 [2] : vector<4x8x8xf32> to vector<4x8xf32>
    %39 = vector.shape_cast %38 : vector<4x8xf32> to vector<4x8x1xf32>
    %40 = vector.broadcast %39 : vector<4x8x1xf32> to vector<4x8x8xf32>
    %41 = arith.subf %37, %40 : vector<4x8x8xf32>
    %42 = math.exp %41 : vector<4x8x8xf32>
    %cst_39 = arith.constant dense<0.000000e+00> : vector<4x8xf32>
    %43 = vector.multi_reduction <add>, %42, %cst_39 [2] : vector<4x8x8xf32> to vector<4x8xf32>
    %44 = vector.shape_cast %43 : vector<4x8xf32> to vector<4x8x1xf32>
    %45 = tpu.reciprocal %44 {approx = true} : vector<4x8x1xf32> -> vector<4x8x1xf32>
    %46 = vector.broadcast %45 : vector<4x8x1xf32> to vector<4x8x8xf32>
    %47 = arith.mulf %42, %46 : vector<4x8x8xf32>
    "tpu.trace_start"() <{level = 10 : i32, message = "hqk,hke->hqe"}> : () -> ()
    %cst_40 = arith.constant dense<0.000000e+00> : vector<4x8x8xf32>
    %48 = tpu.matmul %47, %31, %cst_40 {dimension_numbers = #tpu.dot_dimension_numbers<[2], [1], [1], [2], [0, 0, 0, 1, 1, 2], [0], [0]>} : vector<4x8x8xf32>, vector<4x8x8xf32>, vector<4x8x8xf32> -> vector<4x8x8xf32>
    "tpu.trace_stop"() : () -> ()
    "tpu.trace_start"() <{level = 10 : i32, message = "hse,hed->hsd"}> : () -> ()
    %cst_41 = arith.constant dense<0.000000e+00> : vector<4x8x32xf32>
    %49 = tpu.matmul %48, %16, %cst_41 {dimension_numbers = #tpu.dot_dimension_numbers<[2], [1], [1], [2], [0, 0, 0, 1, 1, 2], [0], [0]>} : vector<4x8x8xf32>, vector<4x8x32xf32>, vector<4x8x32xf32> -> vector<4x8x32xf32>
    "tpu.trace_stop"() : () -> ()
    %cst_42 = arith.constant dense<0.000000e+00> : vector<8x32xf32>
    %50 = vector.multi_reduction <add>, %49, %cst_42 [0] : vector<4x8x32xf32> to vector<8x32xf32>
    %51 = vector.broadcast %17 : vector<1x32xf32> to vector<8x32xf32>
    %52 = arith.addf %50, %51 : vector<8x32xf32>
    %53 = arith.addf %52, %3 : vector<8x32xf32>
    %cst_43 = arith.constant dense<0.000000e+00> : vector<8xf32>
    %54 = vector.multi_reduction <add>, %53, %cst_43 [1] : vector<8x32xf32> to vector<8xf32>
    %55 = vector.shape_cast %54 : vector<8xf32> to vector<8x1xf32>
    %cst_44 = arith.constant 3.200000e+01 : f32
    %56 = vector.broadcast %cst_44 : f32 to vector<8x1xf32>
    %57 = arith.divf %55, %56 : vector<8x1xf32>
    %58 = vector.broadcast %57 : vector<8x1xf32> to vector<8x32xf32>
    %59 = arith.subf %53, %58 : vector<8x32xf32>
    %60 = arith.mulf %59, %59 : vector<8x32xf32>
    %cst_45 = arith.constant dense<0.000000e+00> : vector<8xf32>
    %61 = vector.multi_reduction <add>, %60, %cst_45 [1] : vector<8x32xf32> to vector<8xf32>
    %62 = vector.shape_cast %61 : vector<8xf32> to vector<8x1xf32>
    %cst_46 = arith.constant 3.200000e+01 : f32
    %63 = vector.broadcast %cst_46 : f32 to vector<8x1xf32>
    %64 = arith.divf %62, %63 : vector<8x1xf32>
    %cst_47 = arith.constant 9.99999974E-6 : f32
    %65 = vector.broadcast %cst_47 : f32 to vector<8x1xf32>
    %66 = arith.addf %64, %65 : vector<8x1xf32>
    %67 = math.rsqrt %66 : vector<8x1xf32>
    %c0_48 = arith.constant 0 : index
    %c0_49 = arith.constant 0 : index
    %c0_50 = arith.constant 0 : index
    %68 = vector.load %arg19[%c0_48, %c0_49, %c0_50] : memref<3x1x32xf32, #tpu.memory_space<vmem>>, vector<1x1x32xf32>
    %69 = vector.shape_cast %68 : vector<1x1x32xf32> to vector<1x32xf32>
    %70 = vector.broadcast %67 : vector<8x1xf32> to vector<8x32xf32>
    %71 = arith.mulf %59, %70 : vector<8x32xf32>
    %72 = vector.broadcast %69 : vector<1x32xf32> to vector<8x32xf32>
    %73 = arith.mulf %72, %71 : vector<8x32xf32>
    %c0_51 = arith.constant 0 : index
    %c0_52 = arith.constant 0 : index
    %c0_53 = arith.constant 0 : index
    %74 = vector.load %arg20[%c0_51, %c0_52, %c0_53] : memref<3x1x32xf32, #tpu.memory_space<vmem>>, vector<1x1x32xf32>
    %75 = vector.shape_cast %74 : vector<1x1x32xf32> to vector<1x32xf32>
    %76 = vector.broadcast %75 : vector<1x32xf32> to vector<8x32xf32>
    %77 = arith.addf %73, %76 : vector<8x32xf32>
    %c0_54 = arith.constant 0 : index
    %c0_55 = arith.constant 0 : index
    %c0_56 = arith.constant 0 : index
    %78 = vector.load %arg9[%c0_54, %c0_55, %c0_56] : memref<4x32x8xf32, #tpu.memory_space<vmem>>, vector<4x32x8xf32>
    %c0_57 = arith.constant 0 : index
    %c0_58 = arith.constant 0 : index
    %c0_59 = arith.constant 0 : index
    %79 = vector.load %arg10[%c0_57, %c0_58, %c0_59] : memref<4x1x8xf32, #tpu.memory_space<vmem>>, vector<4x1x8xf32>
    %c0_60 = arith.constant 0 : index
    %c0_61 = arith.constant 0 : index
    %c0_62 = arith.constant 0 : index
    %c0_63 = arith.constant 0 : index
    %80 = vector.load %arg11[%c0_60, %c0_61, %c0_62, %c0_63] : memref<2x4x32x8xf32, #tpu.memory_space<vmem>>, vector<1x4x32x8xf32>
    %81 = vector.shape_cast %80 : vector<1x4x32x8xf32> to vector<4x32x8xf32>
    %c0_64 = arith.constant 0 : index
    %c0_65 = arith.constant 0 : index
    %c0_66 = arith.constant 0 : index
    %c0_67 = arith.constant 0 : index
    %82 = vector.load %arg12[%c0_64, %c0_65, %c0_66, %c0_67] : memref<2x4x1x8xf32, #tpu.memory_space<vmem>>, vector<1x4x1x8xf32>
    %83 = vector.shape_cast %82 : vector<1x4x1x8xf32> to vector<4x1x8xf32>
    %c1_68 = arith.constant 1 : index
    %c0_69 = arith.constant 0 : index
    %c0_70 = arith.constant 0 : index
    %c0_71 = arith.constant 0 : index
    %84 = vector.load %arg11[%c1_68, %c0_69, %c0_70, %c0_71] : memref<2x4x32x8xf32, #tpu.memory_space<vmem>>, vector<1x4x32x8xf32>
    %85 = vector.shape_cast %84 : vector<1x4x32x8xf32> to vector<4x32x8xf32>
    %c1_72 = arith.constant 1 : index
    %c0_73 = arith.constant 0 : index
    %c0_74 = arith.constant 0 : index
    %c0_75 = arith.constant 0 : index
    %86 = vector.load %arg12[%c1_72, %c0_73, %c0_74, %c0_75] : memref<2x4x1x8xf32, #tpu.memory_space<vmem>>, vector<1x4x1x8xf32>
    %87 = vector.shape_cast %86 : vector<1x4x1x8xf32> to vector<4x1x8xf32>
    %c0_76 = arith.constant 0 : index
    %c0_77 = arith.constant 0 : index
    %c0_78 = arith.constant 0 : index
    %88 = vector.load %arg13[%c0_76, %c0_77, %c0_78] : memref<4x8x32xf32, #tpu.memory_space<vmem>>, vector<4x8x32xf32>
    %c0_79 = arith.constant 0 : index
    %c0_80 = arith.constant 0 : index
    %89 = vector.load %arg14[%c0_79, %c0_80] : memref<1x32xf32, #tpu.memory_space<vmem>>, vector<1x32xf32>
    %c0_81 = arith.constant 0 : index
    %c0_82 = arith.constant 0 : index
    %90 = vector.load %arg4[%c0_81, %c0_82] : memref<8x8xf32, #tpu.memory_space<vmem>>, vector<8x8xf32>
    %91 = vector.shape_cast %77 : vector<8x32xf32> to vector<1x8x32xf32>
    %92 = vector.broadcast %91 : vector<1x8x32xf32> to vector<4x8x32xf32>
    %93 = vector.shape_cast %1 : vector<8x32xf32> to vector<1x8x32xf32>
    %94 = vector.broadcast %93 : vector<1x8x32xf32> to vector<4x8x32xf32>
    "tpu.trace_start"() <{level = 10 : i32, message = "hsd,hde->hse"}> : () -> ()
    %cst_83 = arith.constant dense<0.000000e+00> : vector<4x8x8xf32>
    %95 = tpu.matmul %92, %78, %cst_83 {dimension_numbers = #tpu.dot_dimension_numbers<[2], [1], [1], [2], [0, 0, 0, 1, 1, 2], [0], [0]>} : vector<4x8x32xf32>, vector<4x32x8xf32>, vector<4x8x8xf32> -> vector<4x8x8xf32>
    "tpu.trace_stop"() : () -> ()
    %96 = vector.broadcast %79 : vector<4x1x8xf32> to vector<4x8x8xf32>
    %97 = arith.addf %95, %96 : vector<4x8x8xf32>
    "tpu.trace_start"() <{level = 10 : i32, message = "hsd,hde->hse"}> : () -> ()
    %cst_84 = arith.constant dense<0.000000e+00> : vector<4x8x8xf32>
    %98 = tpu.matmul %94, %81, %cst_84 {dimension_numbers = #tpu.dot_dimension_numbers<[2], [1], [1], [2], [0, 0, 0, 1, 1, 2], [0], [0]>} : vector<4x8x32xf32>, vector<4x32x8xf32>, vector<4x8x8xf32> -> vector<4x8x8xf32>
    "tpu.trace_stop"() : () -> ()
    %99 = vector.broadcast %83 : vector<4x1x8xf32> to vector<4x8x8xf32>
    %100 = arith.addf %98, %99 : vector<4x8x8xf32>
    "tpu.trace_start"() <{level = 10 : i32, message = "hsd,hde->hse"}> : () -> ()
    %cst_85 = arith.constant dense<0.000000e+00> : vector<4x8x8xf32>
    %101 = tpu.matmul %94, %85, %cst_85 {dimension_numbers = #tpu.dot_dimension_numbers<[2], [1], [1], [2], [0, 0, 0, 1, 1, 2], [0], [0]>} : vector<4x8x32xf32>, vector<4x32x8xf32>, vector<4x8x8xf32> -> vector<4x8x8xf32>
    "tpu.trace_stop"() : () -> ()
    %102 = vector.broadcast %87 : vector<4x1x8xf32> to vector<4x8x8xf32>
    %103 = arith.addf %101, %102 : vector<4x8x8xf32>
    "tpu.trace_start"() <{level = 10 : i32, message = "hqe,hke->hqk"}> : () -> ()
    %cst_86 = arith.constant dense<0.000000e+00> : vector<4x8x8xf32>
    %104 = tpu.matmul %97, %100, %cst_86 {dimension_numbers = #tpu.dot_dimension_numbers<[2], [2], [1], [1], [0, 0, 0, 1, 1, 1], [0], [0]>} : vector<4x8x8xf32>, vector<4x8x8xf32>, vector<4x8x8xf32> -> vector<4x8x8xf32>
    "tpu.trace_stop"() : () -> ()
    %cst_87 = arith.constant 0.353553385 : f32
    %105 = vector.broadcast %cst_87 : f32 to vector<4x8x8xf32>
    %106 = arith.mulf %104, %105 : vector<4x8x8xf32>
    %107 = vector.shape_cast %90 : vector<8x8xf32> to vector<1x8x8xf32>
    %108 = vector.broadcast %107 : vector<1x8x8xf32> to vector<4x8x8xf32>
    %109 = arith.addf %106, %108 : vector<4x8x8xf32>
    %cst_88 = arith.constant dense<0xFF800000> : vector<4x8xf32>
    %110 = vector.multi_reduction <maximumf>, %109, %cst_88 [2] : vector<4x8x8xf32> to vector<4x8xf32>
    %111 = vector.shape_cast %110 : vector<4x8xf32> to vector<4x8x1xf32>
    %112 = vector.broadcast %111 : vector<4x8x1xf32> to vector<4x8x8xf32>
    %113 = arith.subf %109, %112 : vector<4x8x8xf32>
    %114 = math.exp %113 : vector<4x8x8xf32>
    %cst_89 = arith.constant dense<0.000000e+00> : vector<4x8xf32>
    %115 = vector.multi_reduction <add>, %114, %cst_89 [2] : vector<4x8x8xf32> to vector<4x8xf32>
    %116 = vector.shape_cast %115 : vector<4x8xf32> to vector<4x8x1xf32>
    %117 = tpu.reciprocal %116 {approx = true} : vector<4x8x1xf32> -> vector<4x8x1xf32>
    %118 = vector.broadcast %117 : vector<4x8x1xf32> to vector<4x8x8xf32>
    %119 = arith.mulf %114, %118 : vector<4x8x8xf32>
    "tpu.trace_start"() <{level = 10 : i32, message = "hqk,hke->hqe"}> : () -> ()
    %cst_90 = arith.constant dense<0.000000e+00> : vector<4x8x8xf32>
    %120 = tpu.matmul %119, %103, %cst_90 {dimension_numbers = #tpu.dot_dimension_numbers<[2], [1], [1], [2], [0, 0, 0, 1, 1, 2], [0], [0]>} : vector<4x8x8xf32>, vector<4x8x8xf32>, vector<4x8x8xf32> -> vector<4x8x8xf32>
    "tpu.trace_stop"() : () -> ()
    "tpu.trace_start"() <{level = 10 : i32, message = "hse,hed->hsd"}> : () -> ()
    %cst_91 = arith.constant dense<0.000000e+00> : vector<4x8x32xf32>
    %121 = tpu.matmul %120, %88, %cst_91 {dimension_numbers = #tpu.dot_dimension_numbers<[2], [1], [1], [2], [0, 0, 0, 1, 1, 2], [0], [0]>} : vector<4x8x8xf32>, vector<4x8x32xf32>, vector<4x8x32xf32> -> vector<4x8x32xf32>
    "tpu.trace_stop"() : () -> ()
    %cst_92 = arith.constant dense<0.000000e+00> : vector<8x32xf32>
    %122 = vector.multi_reduction <add>, %121, %cst_92 [0] : vector<4x8x32xf32> to vector<8x32xf32>
    %123 = vector.broadcast %89 : vector<1x32xf32> to vector<8x32xf32>
    %124 = arith.addf %122, %123 : vector<8x32xf32>
    %125 = arith.addf %124, %77 : vector<8x32xf32>
    %cst_93 = arith.constant dense<0.000000e+00> : vector<8xf32>
    %126 = vector.multi_reduction <add>, %125, %cst_93 [1] : vector<8x32xf32> to vector<8xf32>
    %127 = vector.shape_cast %126 : vector<8xf32> to vector<8x1xf32>
    %cst_94 = arith.constant 3.200000e+01 : f32
    %128 = vector.broadcast %cst_94 : f32 to vector<8x1xf32>
    %129 = arith.divf %127, %128 : vector<8x1xf32>
    %130 = vector.broadcast %129 : vector<8x1xf32> to vector<8x32xf32>
    %131 = arith.subf %125, %130 : vector<8x32xf32>
    %132 = arith.mulf %131, %131 : vector<8x32xf32>
    %cst_95 = arith.constant dense<0.000000e+00> : vector<8xf32>
    %133 = vector.multi_reduction <add>, %132, %cst_95 [1] : vector<8x32xf32> to vector<8xf32>
    %134 = vector.shape_cast %133 : vector<8xf32> to vector<8x1xf32>
    %cst_96 = arith.constant 3.200000e+01 : f32
    %135 = vector.broadcast %cst_96 : f32 to vector<8x1xf32>
    %136 = arith.divf %134, %135 : vector<8x1xf32>
    %cst_97 = arith.constant 9.99999974E-6 : f32
    %137 = vector.broadcast %cst_97 : f32 to vector<8x1xf32>
    %138 = arith.addf %136, %137 : vector<8x1xf32>
    %139 = math.rsqrt %138 : vector<8x1xf32>
    %c1_98 = arith.constant 1 : index
    %c0_99 = arith.constant 0 : index
    %c0_100 = arith.constant 0 : index
    %140 = vector.load %arg19[%c1_98, %c0_99, %c0_100] : memref<3x1x32xf32, #tpu.memory_space<vmem>>, vector<1x1x32xf32>
    %141 = vector.shape_cast %140 : vector<1x1x32xf32> to vector<1x32xf32>
    %142 = vector.broadcast %139 : vector<8x1xf32> to vector<8x32xf32>
    %143 = arith.mulf %131, %142 : vector<8x32xf32>
    %144 = vector.broadcast %141 : vector<1x32xf32> to vector<8x32xf32>
    %145 = arith.mulf %144, %143 : vector<8x32xf32>
    %c1_101 = arith.constant 1 : index
    %c0_102 = arith.constant 0 : index
    %c0_103 = arith.constant 0 : index
    %146 = vector.load %arg20[%c1_101, %c0_102, %c0_103] : memref<3x1x32xf32, #tpu.memory_space<vmem>>, vector<1x1x32xf32>
    %147 = vector.shape_cast %146 : vector<1x1x32xf32> to vector<1x32xf32>
    %148 = vector.broadcast %147 : vector<1x32xf32> to vector<8x32xf32>
    %149 = arith.addf %145, %148 : vector<8x32xf32>
    %c0_104 = arith.constant 0 : index
    %c0_105 = arith.constant 0 : index
    %150 = vector.load %arg15[%c0_104, %c0_105] : memref<32x64xf32, #tpu.memory_space<vmem>>, vector<32x64xf32>
    %cst_106 = arith.constant dense<0.000000e+00> : vector<8x64xf32>
    %151 = tpu.matmul %149, %150, %cst_106 {dimension_numbers = #tpu.dot_dimension_numbers<[1], [0], [0], [1], [0, 0, 1, 1], [], []>} : vector<8x32xf32>, vector<32x64xf32>, vector<8x64xf32> -> vector<8x64xf32>
    %c0_107 = arith.constant 0 : index
    %c0_108 = arith.constant 0 : index
    %152 = vector.load %arg16[%c0_107, %c0_108] : memref<1x64xf32, #tpu.memory_space<vmem>>, vector<1x64xf32>
    %153 = vector.broadcast %152 : vector<1x64xf32> to vector<8x64xf32>
    %154 = arith.addf %151, %153 : vector<8x64xf32>
    %cst_109 = arith.constant 0.000000e+00 : f32
    %155 = vector.broadcast %cst_109 : f32 to vector<8x64xf32>
    %156 = arith.maximumf %154, %155 : vector<8x64xf32>
    %c0_110 = arith.constant 0 : index
    %c0_111 = arith.constant 0 : index
    %157 = vector.load %arg17[%c0_110, %c0_111] : memref<64x32xf32, #tpu.memory_space<vmem>>, vector<64x32xf32>
    %cst_112 = arith.constant dense<0.000000e+00> : vector<8x32xf32>
    %158 = tpu.matmul %156, %157, %cst_112 {dimension_numbers = #tpu.dot_dimension_numbers<[1], [0], [0], [1], [0, 0, 1, 1], [], []>} : vector<8x64xf32>, vector<64x32xf32>, vector<8x32xf32> -> vector<8x32xf32>
    %c0_113 = arith.constant 0 : index
    %c0_114 = arith.constant 0 : index
    %159 = vector.load %arg18[%c0_113, %c0_114] : memref<1x32xf32, #tpu.memory_space<vmem>>, vector<1x32xf32>
    %160 = vector.broadcast %159 : vector<1x32xf32> to vector<8x32xf32>
    %161 = arith.addf %158, %160 : vector<8x32xf32>
    %162 = arith.addf %161, %149 : vector<8x32xf32>
    %cst_115 = arith.constant dense<0.000000e+00> : vector<8xf32>
    %163 = vector.multi_reduction <add>, %162, %cst_115 [1] : vector<8x32xf32> to vector<8xf32>
    %164 = vector.shape_cast %163 : vector<8xf32> to vector<8x1xf32>
    %cst_116 = arith.constant 3.200000e+01 : f32
    %165 = vector.broadcast %cst_116 : f32 to vector<8x1xf32>
    %166 = arith.divf %164, %165 : vector<8x1xf32>
    %167 = vector.broadcast %166 : vector<8x1xf32> to vector<8x32xf32>
    %168 = arith.subf %162, %167 : vector<8x32xf32>
    %169 = arith.mulf %168, %168 : vector<8x32xf32>
    %cst_117 = arith.constant dense<0.000000e+00> : vector<8xf32>
    %170 = vector.multi_reduction <add>, %169, %cst_117 [1] : vector<8x32xf32> to vector<8xf32>
    %171 = vector.shape_cast %170 : vector<8xf32> to vector<8x1xf32>
    %cst_118 = arith.constant 3.200000e+01 : f32
    %172 = vector.broadcast %cst_118 : f32 to vector<8x1xf32>
    %173 = arith.divf %171, %172 : vector<8x1xf32>
    %cst_119 = arith.constant 9.99999974E-6 : f32
    %174 = vector.broadcast %cst_119 : f32 to vector<8x1xf32>
    %175 = arith.addf %173, %174 : vector<8x1xf32>
    %176 = math.rsqrt %175 : vector<8x1xf32>
    %c2_120 = arith.constant 2 : index
    %c0_121 = arith.constant 0 : index
    %c0_122 = arith.constant 0 : index
    %177 = vector.load %arg19[%c2_120, %c0_121, %c0_122] : memref<3x1x32xf32, #tpu.memory_space<vmem>>, vector<1x1x32xf32>
    %178 = vector.shape_cast %177 : vector<1x1x32xf32> to vector<1x32xf32>
    %179 = vector.broadcast %176 : vector<8x1xf32> to vector<8x32xf32>
    %180 = arith.mulf %168, %179 : vector<8x32xf32>
    %181 = vector.broadcast %178 : vector<1x32xf32> to vector<8x32xf32>
    %182 = arith.mulf %181, %180 : vector<8x32xf32>
    %c2_123 = arith.constant 2 : index
    %c0_124 = arith.constant 0 : index
    %c0_125 = arith.constant 0 : index
    %183 = vector.load %arg20[%c2_123, %c0_124, %c0_125] : memref<3x1x32xf32, #tpu.memory_space<vmem>>, vector<1x1x32xf32>
    %184 = vector.shape_cast %183 : vector<1x1x32xf32> to vector<1x32xf32>
    %185 = vector.broadcast %184 : vector<1x32xf32> to vector<8x32xf32>
    %186 = arith.addf %182, %185 : vector<8x32xf32>
    %c0_126 = arith.constant 0 : index
    %c0_127 = arith.constant 0 : index
    %c0_128 = arith.constant 0 : index
    %187 = vector.load %arg21[%c0_126, %c0_127, %c0_128] : memref<1x8x32xf32, #tpu.memory_space<vmem>>, vector<1x8x32xf32>
    %188 = vector.shape_cast %187 : vector<1x8x32xf32> to vector<8x32xf32>
    %189 = vector.shape_cast %186 : vector<8x32xf32> to vector<1x8x32xf32>
    tpu.vector_store %arg21[%c0_126, %c0_127, %c0_128], %189 {strides = array<i32>} : memref<1x8x32xf32, #tpu.memory_space<vmem>>, vector<1x8x32xf32>,
    return
  }
  func.func @transform_0(%arg0: i32) -> (i32, i32, i32) {
    %c0_i32 = arith.constant 0 : i32
    %c0_i32_0 = arith.constant 0 : i32
    %c0_i32_1 = arith.constant 0 : i32
    return %arg0, %c0_i32, %c0_i32_0 : i32, i32, i32
  }
  func.func @transform_1(%arg0: i32) -> (i32, i32, i32) {
    %c0_i32 = arith.constant 0 : i32
    %c0_i32_0 = arith.constant 0 : i32
    %c0_i32_1 = arith.constant 0 : i32
    return %arg0, %c0_i32, %c0_i32_0 : i32, i32, i32
  }
  func.func @transform_2(%arg0: i32) -> (i32, i32) {
    %c0_i32 = arith.constant 0 : i32
    %c0_i32_0 = arith.constant 0 : i32
    %c0_i32_1 = arith.constant 0 : i32
    return %c0_i32, %c0_i32_0 : i32, i32
  }
  func.func @transform_3(%arg0: i32) -> (i32, i32) {
    %c0_i32 = arith.constant 0 : i32
    %c0_i32_0 = arith.constant 0 : i32
    %c0_i32_1 = arith.constant 0 : i32
    return %c0_i32, %c0_i32_0 : i32, i32
  }
  func.func @transform_4(%arg0: i32) -> (i32, i32, i32, i32) {
    %c0_i32 = arith.constant 0 : i32
    %c0_i32_0 = arith.constant 0 : i32
    %c0_i32_1 = arith.constant 0 : i32
    %c0_i32_2 = arith.constant 0 : i32
    %c0_i32_3 = arith.constant 0 : i32
    return %c0_i32, %c0_i32_0, %c0_i32_1, %c0_i32_2 : i32, i32, i32, i32
  }
  func.func @transform_5(%arg0: i32) -> (i32, i32, i32, i32) {
    %c0_i32 = arith.constant 0 : i32
    %c0_i32_0 = arith.constant 0 : i32
    %c0_i32_1 = arith.constant 0 : i32
    %c0_i32_2 = arith.constant 0 : i32
    %c0_i32_3 = arith.constant 0 : i32
    return %c0_i32, %c0_i32_0, %c0_i32_1, %c0_i32_2 : i32, i32, i32, i32
  }
  func.func @transform_6(%arg0: i32) -> (i32, i32, i32) {
    %c0_i32 = arith.constant 0 : i32
    %c0_i32_0 = arith.constant 0 : i32
    %c0_i32_1 = arith.constant 0 : i32
    %c0_i32_2 = arith.constant 0 : i32
    return %c0_i32, %c0_i32_0, %c0_i32_1 : i32, i32, i32
  }
  func.func @transform_7(%arg0: i32) -> (i32, i32) {
    %c0_i32 = arith.constant 0 : i32
    %c0_i32_0 = arith.constant 0 : i32
    %c0_i32_1 = arith.constant 0 : i32
    return %c0_i32, %c0_i32_0 : i32, i32
  }
  func.func @transform_8(%arg0: i32) -> (i32, i32, i32) {
    %c0_i32 = arith.constant 0 : i32
    %c0_i32_0 = arith.constant 0 : i32
    %c0_i32_1 = arith.constant 0 : i32
    %c0_i32_2 = arith.constant 0 : i32
    return %c0_i32, %c0_i32_0, %c0_i32_1 : i32, i32, i32
  }
  func.func @transform_9(%arg0: i32) -> (i32, i32, i32) {
    %c0_i32 = arith.constant 0 : i32
    %c0_i32_0 = arith.constant 0 : i32
    %c0_i32_1 = arith.constant 0 : i32
    %c0_i32_2 = arith.constant 0 : i32
    return %c0_i32, %c0_i32_0, %c0_i32_1 : i32, i32, i32
  }
  func.func @transform_10(%arg0: i32) -> (i32, i32, i32, i32) {
    %c0_i32 = arith.constant 0 : i32
    %c0_i32_0 = arith.constant 0 : i32
    %c0_i32_1 = arith.constant 0 : i32
    %c0_i32_2 = arith.constant 0 : i32
    %c0_i32_3 = arith.constant 0 : i32
    return %c0_i32, %c0_i32_0, %c0_i32_1, %c0_i32_2 : i32, i32, i32, i32
  }
  func.func @transform_11(%arg0: i32) -> (i32, i32, i32, i32) {
    %c0_i32 = arith.constant 0 : i32
    %c0_i32_0 = arith.constant 0 : i32
    %c0_i32_1 = arith.constant 0 : i32
    %c0_i32_2 = arith.constant 0 : i32
    %c0_i32_3 = arith.constant 0 : i32
    return %c0_i32, %c0_i32_0, %c0_i32_1, %c0_i32_2 : i32, i32, i32, i32
  }
  func.func @transform_12(%arg0: i32) -> (i32, i32, i32) {
    %c0_i32 = arith.constant 0 : i32
    %c0_i32_0 = arith.constant 0 : i32
    %c0_i32_1 = arith.constant 0 : i32
    %c0_i32_2 = arith.constant 0 : i32
    return %c0_i32, %c0_i32_0, %c0_i32_1 : i32, i32, i32
  }
  func.func @transform_13(%arg0: i32) -> (i32, i32) {
    %c0_i32 = arith.constant 0 : i32
    %c0_i32_0 = arith.constant 0 : i32
    %c0_i32_1 = arith.constant 0 : i32
    return %c0_i32, %c0_i32_0 : i32, i32
  }
  func.func @transform_14(%arg0: i32) -> (i32, i32) {
    %c0_i32 = arith.constant 0 : i32
    %c0_i32_0 = arith.constant 0 : i32
    %c0_i32_1 = arith.constant 0 : i32
    return %c0_i32, %c0_i32_0 : i32, i32
  }
  func.func @transform_15(%arg0: i32) -> (i32, i32) {
    %c0_i32 = arith.constant 0 : i32
    %c0_i32_0 = arith.constant 0 : i32
    %c0_i32_1 = arith.constant 0 : i32
    return %c0_i32, %c0_i32_0 : i32, i32
  }
  func.func @transform_16(%arg0: i32) -> (i32, i32) {
    %c0_i32 = arith.constant 0 : i32
    %c0_i32_0 = arith.constant 0 : i32
    %c0_i32_1 = arith.constant 0 : i32
    return %c0_i32, %c0_i32_0 : i32, i32
  }
  func.func @transform_17(%arg0: i32) -> (i32, i32) {
    %c0_i32 = arith.constant 0 : i32
    %c0_i32_0 = arith.constant 0 : i32
    %c0_i32_1 = arith.constant 0 : i32
    return %c0_i32, %c0_i32_0 : i32, i32
  }
  func.func @transform_18(%arg0: i32) -> (i32, i32, i32) {
    %c0_i32 = arith.constant 0 : i32
    %c0_i32_0 = arith.constant 0 : i32
    %c0_i32_1 = arith.constant 0 : i32
    %c0_i32_2 = arith.constant 0 : i32
    return %c0_i32, %c0_i32_0, %c0_i32_1 : i32, i32, i32
  }
  func.func @transform_19(%arg0: i32) -> (i32, i32, i32) {
    %c0_i32 = arith.constant 0 : i32
    %c0_i32_0 = arith.constant 0 : i32
    %c0_i32_1 = arith.constant 0 : i32
    %c0_i32_2 = arith.constant 0 : i32
    return %c0_i32, %c0_i32_0, %c0_i32_1 : i32, i32, i32
  }
  func.func @transform_20(%arg0: i32) -> (i32, i32, i32) {
    %c0_i32 = arith.constant 0 : i32
    %c0_i32_0 = arith.constant 0 : i32
    %c0_i32_1 = arith.constant 0 : i32
    return %arg0, %c0_i32, %c0_i32_0 : i32, i32, i32
  }
}

</mosaic_0001>

<bundles_post_ra>
// kernel: tpu_custom_call.1
= control target key start
LH: loop header
LB: loop body
LE: loop exit
PB: predicated region body
PF: predicated region fallthrough
CT: control target
= control target key end

     0   :  { %s6934_s0 = inlined_call_operand.vmem [shape: f32[2,8,32], index: 0, kind: input, shape index: {}]   ;;  %s6935_s1 = inlined_call_operand.vmem [shape: f32[2,8,32], index: 1, kind: input, shape index: {}]   ;;  %s6936_s2 = inlined_call_operand.vmem [shape: f32[8,8], index: 2, kind: input, shape index: {}]   ;;  %s6937_s3 = inlined_call_operand.vmem [shape: f32[8,8], index: 3, kind: input, shape index: {}]   ;;  %s6938_s4 = inlined_call_operand.vmem [shape: f32[3,4,32,8], index: 4, kind: input, shape index: {}]   ;;  %s6939_s5 = inlined_call_operand.vmem [shape: f32[3,4,1,8], index: 5, kind: input, shape index: {}]   ;;  %s6940_s6 = inlined_call_operand.vmem [shape: f32[4,8,32], index: 6, kind: input, shape index: {}]   ;;  %s6941_s7 = inlined_call_operand.vmem [shape: f32[1,32], index: 7, kind: input, shape index: {}]   ;;  %s6942_s8 = inlined_call_operand.vmem [shape: f32[4,32,8], index: 8, kind: input, shape index: {}]   ;;  %s6943_s9 = inlined_call_operand.vmem [shape: f32[4,1,8], index: 9, kind: input, shape index: {}]   ;;  %s6944_s10 = inlined_call_operand.vmem [shape: f32[2,4,32,8], index: 10, kind: input, shape index: {}]   ;;  %s6945_s11 = inlined_call_operand.vmem [shape: f32[2,4,1,8], index: 11, kind: input, shape index: {}]   ;;  %s6946_s12 = inlined_call_operand.vmem [shape: f32[4,8,32], index: 12, kind: input, shape index: {}]   ;;  %s6947_s13 = inlined_call_operand.vmem [shape: f32[1,32], index: 13, kind: input, shape index: {}]   ;;  %s6948_s14 = inlined_call_operand.vmem [shape: f32[32,64], index: 14, kind: input, shape index: {}]   ;;  %s6949_s15 = inlined_call_operand.vmem [shape: f32[1,64], index: 15, kind: input, shape index: {}]   ;;  %s6950_s16 = inlined_call_operand.vmem [shape: f32[64,32], index: 16, kind: input, shape index: {}]   ;;  %s6951_s17 = inlined_call_operand.vmem [shape: f32[1,32], index: 17, kind: input, shape index: {}]   ;;  %s6952_s18 = inlined_call_operand.vmem [shape: f32[3,1,32], index: 18, kind: input, shape index: {}]   ;;  %s6953_s19 = inlined_call_operand.vmem [shape: f32[3,1,32], index: 19, kind: input, shape index: {}]   ;;  %s6954_s20 = inlined_call_operand.hbm [shape: f32[2,8,32], index: 20, kind: output, shape index: {}]  }
   0x1   :  { %6964 = sst [smem:[#allocation11_spill]] %s6934_s0 }
   0x2   :  { %6965 = sst [smem:[#allocation12_spill]] %s6935_s1 }
   0x3   :  { %6966 = sst [smem:[#allocation13_spill]] %s6936_s2 }
   0x4   :  { %6967 = sst [smem:[#allocation14_spill]] %s6937_s3 }
   0x5   :  { %6968 = sst [smem:[#allocation15_spill]] %s6938_s4 }
   0x6   :  { %6969 = sst [smem:[#allocation16_spill]] %s6939_s5 }
   0x7   :  { %6970 = sst [smem:[#allocation17_spill]] %s6954_s20 }
   0x8   :  { %25 = vsyncpa [#allocation3], 0 }
   0x9   :  { %27 = vsyncpa [#allocation3 + $0x1], 0  ;;  %s6058_s1 = smov 0   ;;  %s6060_s22 = smov 0  }
   0xa   :  { %s6062_s23 = smov 0   ;;  %s6064_s24 = smov 0  }
   0xb LB: > { %6971 = sst [smem:[#allocation5_spill]] %s5935_s1  ;;  %s6079_s2 = sadd.s32 4294967295, %s5947_s24   ;;  %s5947_s24 = sphi %s6064_s24, %s6990_s24   ;;  %s5943_s23 = sphi %s6062_s23, %s6992_s23   ;;  %s5939_s22 = sphi %s6060_s22, %s6994_s22   ;;  %s5935_s1 = sphi %s6058_s1, %s6993_s1  }
   0xc   : > { %6972 = sst [smem:[#allocation6_spill]] %s5943_s23  ;;  %s4880_s25 = sadd.s32 4294967294, %s5947_s24  }
   0xd   : > { %6973 = sst [smem:[#allocation7_spill]] %s5947_s24  ;;  %s6083_s3 = sadd.s32 1, %s5947_s24  }
   0xe   : > { %6974 = sst [smem:[#allocation8_spill]] %s6083_s3  ;;  %s470_s26 = sadd.s32 1, %s5943_s23 }
   0xf   : > { %s467_s27 = ssub.s32 %s5947_s24, %s6083_s3  ;;  %p480_p0 = scmp.ne.s32.totalorder %s5943_s23, %s5939_s22 }
  0x10   : > { %p468_p1 = scmp.eq.s32.totalorder %s467_s27, 0  ;;  %p481_p2 = scmp.eq.s32.totalorder %s6079_s2, 1 }
  0x11   : > { %p486_p3 = scmp.ne.s32.totalorder %s5939_s22, %s5935_s1  ;;  %p487_p4 = scmp.eq.s32.totalorder %s4880_s25, 1 }
  0x12   : > { %s6094_s28 = scalar_select %p468_p1, %s5943_s23, %s470_s26  }
  0x13   : > { %p6096_p5 = por %p481_p2, %p480_p0  ;;  %p6100_p6 = por %p487_p4, %p486_p3 }
  0x14   : > { %6975 = sst [smem:[#allocation9_spill]] %s6094_s28  ;;  %p4883_p7 = scmp.ge.s32.totalorder %s5947_s24, 1 }
  0x15   : > { %s6977_s29 = scalar_select %p6100_p6, 1, 0 }
  0x16   : > { %p573_p8 = scmp.lt.s32.totalorder %s5947_s24, 3 }
  0x17   : > { %6978 = sst [smem:[#allocation10_spill]] %s6977_s29 }
  0x18   : > { %p574_p9 = pnand %p4883_p7, %p573_p8 }
  0x19   : > { %s6979_s21 = sld [smem:[#allocation15_spill]] (!%p574_p9)  ;;  %v5949_v3 = vmov (!%p574_p9), 0.0|0.0   ;;  %p634_p10 = scmp.lt.s32.totalorder (!%p574_p9), %s6079_s2, 1  ;;  %vm5950_vm0 = vmmov (!%p574_p9), 0   ;;  %v5951_v11 = vmov (!%p574_p9), 0.0   ;;  %vm738_vm1 = vcmask (!%p574_p9), 261120  }
  0x1a   : > { %577 = sbr.rel (%p574_p9) target bundleno = 3837 (0xefd), region = 100  ;;  %5643 = vmatprep.subr.bf16.mxu0 (!%p574_p9), %v5949_v3  ;;  %5649 = vmatprep.subr.bf16.mxu1 (!%p574_p9), %v5949_v3  ;;  %s6980_s1 = sld [smem:[#allocation12_spill]] (!%p574_p9)  ;;  %vm1630_vm2 = vcmask (!%p574_p9), 64512   ;;  %vm4688_vm3 = vcmask (!%p574_p9), 523264  }
  0x1b   : > { %5237 = vmatprep.mubr.msk.f32.mxu0 (!%p574_p9), %vm5950_vm0, %v5951_v11  ;;  %5248 = vmatprep.mubr.msk.f32.mxu1 (!%p574_p9), %vm5950_vm0, %v5951_v11  ;;  %s6981_s5 = sld [smem:[#allocation16_spill]] (!%p574_p9)  ;;  %s6982_s20 = sld [smem:[#allocation13_spill]] (!%p574_p9) }
  0x1c   : > { %s6985_s28 = sld [smem:[#allocation14_spill]] (!%p574_p9)  ;;  %s631_s25 = sand.u32 (!%p574_p9), 1, %s5939_s22  }
  0x1d   : > { %s5044_s27 = sshll.u32 (!%p574_p9), %s6079_s2, 7 }
  0x1f   : > { %v644_v0 = vld [vmem:[%s6979_s21] sm:$0xff] (!%p574_p9)  ;;  %v645_v1 = vld [vmem:[%s6979_s21 + $0x8] sm:$0xff] (!%p574_p9)  ;;  %v646_v6 = vld [vmem:[%s6979_s21 + $0x10] sm:$0xff] (!%p574_p9) }
  0x20   : > { %v648_v2 = vld [vmem:[%s6979_s21 + $0x20] sm:$0xff] (!%p574_p9)  ;;  %v5644_v4 = vpack.c.bf16 (!%p574_p9), %v645_v1, %v644_v0  ;;  %v649_v5 = vld [vmem:[%s6979_s21 + $0x28] sm:$0xff] (!%p574_p9)  ;;  %v647_v7 = vld [vmem:[%s6979_s21 + $0x18] sm:$0xff] (!%p574_p9) }
  0x21   : > { %v5650_v8 = vpack.c.bf16 %v649_v5, %v648_v2  ;;  %v650_v9 = vld [vmem:[%s6979_s21 + $0x30] sm:$0xff]  ;;  %v651_v10 = vld [vmem:[%s6979_s21 + $0x38] sm:$0xff]  ;;  %v5647_v12 = vpack.c.bf16 %v647_v7, %v646_v6  ;;  %s6138_s23 = scalar_select %p634_p10, %s6079_s2, 1  ;;  %v652_v14 = vld [vmem:[%s6979_s21 + $0x40] sm:$0xff] }
  0x22   : > { %5645 = vmatpush3.bf16.msra.mxu0 %v5644_v4  ;;  %v5653_v13 = vpack.c.bf16 %v651_v10, %v650_v9  ;;  %v653_v15 = vld [vmem:[%s6979_s21 + $0x48] sm:$0xff]  ;;  %v656_v16 = vld [vmem:[%s6979_s21 + $0x60] sm:$0xff]  ;;  %v654_v21 = vld [vmem:[%s6979_s21 + $0x50] sm:$0xff]  ;;  %s5952_s2 = smov [#allocation2]  }
  0x23   : > { %5651 = vmatpush3.bf16.msra.mxu1 %v5650_v8  ;;  %5646 = vmatprep.subr.bf16.mxu0 %v5949_v3  ;;  %s6963_s0 = sshll.u32 %s6138_s23, 3  ;;  %v657_v17 = vld [vmem:[%s6979_s21 + $0x68] sm:$0xff]  ;;  %v5656_v19 = vpack.c.bf16 %v653_v15, %v652_v14  ;;  %v655_v22 = vld [vmem:[%s6979_s21 + $0x58] sm:$0xff]  ;;  %v658_v23 = vld [vmem:[%s6979_s21 + $0x70] sm:$0xff]  ;;  %s6983_s29 = sshll.u32 %s6138_s23, 3 }
  0x24   : > { %5652 = vmatprep.subr.bf16.mxu1 %v5949_v3  ;;  %s641_s3 = scalar_lea.vmem %s6980_s1, %s6963_s0  ;;  %v5662_v20 = vpack.c.bf16 %v657_v17, %v656_v16  ;;  %v659_v24 = vld [vmem:[%s6979_s21 + $0x78] sm:$0xff]  ;;  %v5659_v25 = vpack.c.bf16 %v655_v22, %v654_v21  ;;  %v4887_v27 = vld [vmem:[%s6979_s21 + $0x80] sm:$0xff]  ;;  %v4888_v28 = vld [vmem:[%s6979_s21 + $0x88] sm:$0xff]  ;;  %s6984_s0 = sld [smem:[#allocation11_spill]] }
  0x25   : > { %v6160_v18 = vld [vmem:[%s641_s3] sm:$0xff]  ;;  %v5665_v26 = vpack.c.bf16 %v659_v24, %v658_v23  ;;  %v4892_v30 = vld [vmem:[%s6979_s21 + $0xa8] sm:$0xff]  ;;  %v5668_v31 = vpack.c.bf16 %v4888_v28, %v4887_v27  ;;  %v4889_v33 = vld [vmem:[%s6979_s21 + $0x90] sm:$0xff] }
  0x26   : > { %5648 = vmatpush3.bf16.msra.mxu0 %v5647_v12  ;;  %v4891_v29 = vld [vmem:[%s6979_s21 + $0xa0] sm:$0xff]  ;;  %v4890_v34 = vld [vmem:[%s6979_s21 + $0x98] sm:$0xff]  ;;  %v4893_v35 = vld [vmem:[%s6979_s21 + $0xb0] sm:$0xff] }
  0x27   : > { %5654 = vmatpush3.bf16.msra.mxu1 %v5653_v13  ;;  %5655 = vmatprep.subr.bf16.mxu0 %v5949_v3  ;;  %v5674_v32 = vpack.c.bf16 %v4892_v30, %v4891_v29  ;;  %v4894_v36 = vld [vmem:[%s6979_s21 + $0xb8] sm:$0xff]  ;;  %v5671_v37 = vpack.c.bf16 %v4890_v34, %v4889_v33  ;;  %v4895_v39 = vld [vmem:[%s6979_s21 + $0xc0] sm:$0xff]  ;;  %v4896_v40 = vld [vmem:[%s6979_s21 + $0xc8] sm:$0xff] }
  0x28   : > { %5661 = vmatprep.subr.bf16.mxu1 %v5949_v3  ;;  %v5677_v38 = vpack.c.bf16 %v4894_v36, %v4893_v35  ;;  %v4899_v41 = vld [vmem:[%s6979_s21 + $0xe0] sm:$0xff]  ;;  %v4900_v42 = vld [vmem:[%s6979_s21 + $0xe8] sm:$0xff]  ;;  %v5680_v43 = vpack.c.bf16 %v4896_v40, %v4895_v39  ;;  %v4897_v45 = vld [vmem:[%s6979_s21 + $0xd0] sm:$0xff] }
  0x29   : > { %5238 = vmatmul.mubr.msk.f32.vlgmr.msra.gmra.mrb[0].mxu0 %vm738_vm1, %v6160_v18  ;;  %v5686_v44 = vpack.c.bf16 %v4900_v42, %v4899_v41  ;;  %v4898_v46 = vld [vmem:[%s6979_s21 + $0xd8] sm:$0xff]  ;;  %v4901_v47 = vld [vmem:[%s6979_s21 + $0xf0] sm:$0xff]  ;;  %v4907_v51 = vld [vmem:[%s6979_s21 + $0x100] sm:$0xff] }
  0x2a   : > { %5249 = vmatmul.mubr.msk.f32.vlgmr.msra.gmra.mrb[0].mxu1 %vm738_vm1, %v6160_v18  ;;  %5657 = vmatpush3.bf16.msra.mxu0 %v5656_v19  ;;  %v4902_v48 = vld [vmem:[%s6979_s21 + $0xf8] sm:$0xff]  ;;  %v5683_v49 = vpack.c.bf16 %v4898_v46, %v4897_v45  ;;  %v4908_v52 = vld [vmem:[%s6979_s21 + $0x108] sm:$0xff]  ;;  %v4909_v54 = vld [vmem:[%s6979_s21 + $0x110] sm:$0xff]  ;;  %s637_s26 = scalar_lea.vmem %s6984_s0, %s6983_s29  ;;  %s4884_s0 = sshll.u32 %s631_s25, 3 }
  0x2b   : > { %5663 = vmatpush3.bf16.msra.mxu1 %v5662_v20  ;;  %5658 = vmatprep.subr.bf16.mxu0 %v5949_v3  ;;  %v5689_v50 = vpack.c.bf16 %v4902_v48, %v4901_v47  ;;  %v5692_v53 = vpack.c.bf16 %v4908_v52, %v4907_v51  ;;  %v4910_v55 = vld [vmem:[%s6979_s21 + $0x118] sm:$0xff]  ;;  %v4911_v57 = vld [vmem:[%s6979_s21 + $0x120] sm:$0xff]  ;;  %v4912_v58 = vld [vmem:[%s6979_s21 + $0x128] sm:$0xff]  ;;  %s633_s1 = scalar_lea.vmem [#allocation2], %s4884_s0  ;;  %s6986_s29 = sld [smem:[#allocation17_spill]] }
  0x2c   : > { %5664 = vmatprep.subr.bf16.mxu1 %v5949_v3  ;;  %5259 = vmatprep.mubr.msk.f32.mxu0 %vm5950_vm0, %v5951_v11  ;;  %v5695_v56 = vpack.c.bf16 %v4910_v55, %v4909_v54  ;;  %v4915_v59 = vld [vmem:[%s6979_s21 + $0x140] sm:$0xff]  ;;  %v5698_v60 = vpack.c.bf16 %v4912_v58, %v4911_v57  ;;  %v4916_v61 = vld [vmem:[%s6979_s21 + $0x148] sm:$0xff]  ;;  %v4913_v63 = vld [vmem:[%s6979_s21 + $0x130] sm:$0xff]  ;;  %s4809_s23 = sshll.u32 %s633_s1, 4  ;;  %s5889_s0 = sshll.u32 %s5952_s2, 4  ;;  %s6893_s23 = int_to_ptr.vmem [resolvable:$true] %s4809_s23  ;;  %s5890_s0 = int_to_ptr.vmem [resolvable:$false] %s5889_s0 }
  0x2d   : > { %5270 = vmatprep.mubr.msk.f32.mxu1 %vm5950_vm0, %v5951_v11  ;;  %v5704_v62 = vpack.c.bf16 %v4916_v61, %v4915_v59  ;;  %v4914_v0 = vld [vmem:[%s6979_s21 + $0x138] sm:$0xff]  ;;  %v4917_v1 = vld [vmem:[%s6979_s21 + $0x150] sm:$0xff]  ;;  %v4919_v6 = vld [vmem:[%s6979_s21 + $0x160] sm:$0xff]  ;;  %s5891_s24 = scalar_lea.vmem %s5890_s0, 256  ;;  %p5892_p0 = scmp.lt.s32.totalorder %s6893_s23, %s5890_s0 }
  0x2e   : > { %5660 = vmatpush3.bf16.msra.mxu0 %v5659_v25  ;;  %v5701_v2 = vpack.c.bf16 %v4914_v0, %v4913_v63  ;;  %v4918_v4 = vld [vmem:[%s6979_s21 + $0x158] sm:$0xff]  ;;  %v4920_v7 = vld [vmem:[%s6979_s21 + $0x168] sm:$0xff]  ;;  %v4921_v9 = vld [vmem:[%s6979_s21 + $0x170] sm:$0xff] }
  0x2f   : > { %5666 = vmatpush3.bf16.msra.mxu1 %v5665_v26  ;;  %5667 = vmatprep.subr.bf16.mxu0 %v5949_v3  ;;  %v5707_v5 = vpack.c.bf16 %v4918_v4, %v4917_v1  ;;  %v5710_v8 = vpack.c.bf16 %v4920_v7, %v4919_v6  ;;  %v4922_v10 = vld [vmem:[%s6979_s21 + $0x178] sm:$0xff]  ;;  %v4935_v22 = vld [vmem:[%s6981_s5 + $0x4] ss:$0 sm:$0xff]  ;;  %v4936_v24 = vld [vmem:[%s6981_s5 + $0x5] ss:$0 sm:$0xff] }
  0x30   : > { %5673 = vmatprep.subr.bf16.mxu1 %v5949_v3  ;;  %v5713_v12 = vpack.c.bf16 %v4922_v10, %v4921_v9  ;;  %v4927_v25 = vld [vmem:[%s6981_s5] ss:$0 sm:$0xff]  ;;  %v4937_v33 = vld [vmem:[%s6981_s5 + $0x6] ss:$0 sm:$0xff]  ;;  %v4938_v34 = vld [vmem:[%s6981_s5 + $0x7] ss:$0 sm:$0xff] }
  0x31   : > { %5260 = vmatmul.mubr.msk.f32.vlgmr.msra.gmra.mrb[2].mxu0 %vm738_vm1, %v6160_v18  ;;  %v4930_v41 = vld [vmem:[%s6981_s5 + $0x3] ss:$0 sm:$0xff]  ;;  %v4943_v46 = vld [vmem:[%s6981_s5 + $0x8] ss:$0 sm:$0xff]  ;;  %s6891_s30 = scalar_lea.hbm %s6986_s29, %s5044_s27 }
  0x32   : > { %5271 = vmatmul.mubr.msk.f32.vlgmr.msra.gmra.mrb[2].mxu1 %vm738_vm1, %v6160_v18  ;;  %5669 = vmatpush3.bf16.msra.mxu0 %v5668_v31  ;;  %v713_v59 = vld [vmem:[%s6982_s20] sm:$0xff]  ;;  %s5885_s20 = scalar_lea.vmem %s6893_s23, 128 }
  0x33   : > { %5675 = vmatpush3.bf16.msra.mxu1 %v5674_v32  ;;  %5670 = vmatprep.subr.bf16.mxu0 %v5949_v3  ;;  %v4928_v32 = vld [vmem:[%s6981_s5 + $0x1] ss:$0 sm:$0xff]  ;;  %p5886_p11 = scmp.ne.s32.totalorder %s6893_s23, %s5885_s20  ;;  %p5893_p1 = scmp.lt.s32.totalorder %s5891_s24, %s5885_s20 }
  0x34   : > { %5676 = vmatprep.subr.bf16.mxu1 %v5949_v3  ;;  %5281 = vmatprep.mubr.msk.f32.mxu0 %vm5950_vm0, %v5951_v11 }
  0x35   : > { %5292 = vmatprep.mubr.msk.f32.mxu1 %vm5950_vm0, %v5951_v11  ;;  %p5887_p12 = pnand %p5886_p11, %p6096_p5  ;;  %p5894_p2 = por %p5893_p1, %p5892_p0 }
  0x36   : > { %5672 = vmatpush3.bf16.msra.mxu0 %v5671_v37  ;;  %v4929_v37 = vld [vmem:[%s6981_s5 + $0x2] ss:$0 sm:$0xff] }
  0x37   : > { %5678 = vmatpush3.bf16.msra.mxu1 %v5677_v38  ;;  %5679 = vmatprep.subr.bf16.mxu0 %v5949_v3  ;;  %p5888_p13 = pneg %p5887_p12 }
  0x38   : > { %5685 = vmatprep.subr.bf16.mxu1 %v5949_v3 }
  0x39   : > { %5282 = vmatmul.mubr.msk.f32.vlgmr.msra.gmra.mrb[4].mxu0 %vm738_vm1, %v6160_v18  ;;  %p5895_p3 = pnand %p5894_p2, %p5888_p13 }
  0x3a   : > { %5293 = vmatmul.mubr.msk.f32.vlgmr.msra.gmra.mrb[4].mxu1 %vm738_vm1, %v6160_v18  ;;  %5681 = vmatpush3.bf16.msra.mxu0 %v5680_v43 }
  0x3b   : > { %5687 = vmatpush3.bf16.msra.mxu1 %v5686_v44  ;;  %5682 = vmatprep.subr.bf16.mxu0 %v5949_v3 }
  0x3c   : > { %5688 = vmatprep.subr.bf16.mxu1 %v5949_v3  ;;  %5303 = vmatprep.mubr.msk.f32.mxu0 %vm5950_vm0, %v5951_v11 }
  0x3d   : > { %5314 = vmatprep.mubr.msk.f32.mxu1 %vm5950_vm0, %v5951_v11 }
  0x3e   : > { %5684 = vmatpush3.bf16.msra.mxu0 %v5683_v49 }
  0x3f   : > { %5690 = vmatpush3.bf16.msra.mxu1 %v5689_v50  ;;  %5691 = vmatprep.subr.bf16.mxu0 %v5949_v3  ;;  %v4944_v50 = vld [vmem:[%s6981_s5 + $0x9] ss:$0 sm:$0xff] }
  0x40   : > { %5697 = vmatprep.subr.bf16.mxu1 %v5949_v3 }
  0x41   : > { %5304 = vmatmul.mubr.msk.f32.vlgmr.msra.gmra.mrb[6].mxu0 %vm738_vm1, %v6160_v18 }
  0x42   : > { %5315 = vmatmul.mubr.msk.f32.vlgmr.msra.gmra.mrb[6].mxu1 %vm738_vm1, %v6160_v18  ;;  %5693 = vmatpush3.bf16.msra.mxu0 %v5692_v53 }
  0x43   : > { %5694 = vmatprep.subr.bf16.mxu0 %v5949_v3  ;;  %5325 = vmatprep.mubr.msk.f32.mxu0 %vm5950_vm0, %v5951_v11 }
  0x44   : > { %5336 = vmatprep.mubr.msk.f32.mxu1 %vm5950_vm0, %v5951_v11  ;;  %5699 = vmatpush3.bf16.msra.mxu1 %v5698_v60 }
  0x45   : > { %5700 = vmatprep.subr.bf16.mxu1 %v5949_v3 }
  0x46   : > { %5696 = vmatpush3.bf16.msra.mxu0 %v5695_v56 }
  0x47   : > { %5703 = vmatprep.subr.bf16.mxu0 %v5949_v3 }
  0x48   : > { %5702 = vmatpush3.bf16.msra.mxu1 %v5701_v2 }
  0x49   : > { %5326 = vmatmul.mubr.msk.f32.vlgmr.msra.gmra.mrb[8].mxu0 %vm738_vm1, %v6160_v18  ;;  %5709 = vmatprep.subr.bf16.mxu1 %v5949_v3 }
  0x4a   : > { %5705 = vmatpush3.bf16.msra.mxu0 %v5704_v62  ;;  %5347 = vmatprep.mubr.msk.f32.mxu0 %vm5950_vm0, %v5951_v11 }
  0x4b   : > { %5706 = vmatprep.subr.bf16.mxu0 %v5949_v3  ;;  %5337 = vmatmul.mubr.msk.f32.vlgmr.msra.gmra.mrb[8].mxu1 %vm738_vm1, %v6160_v18 }
  0x4c   : > { %5711 = vmatpush3.bf16.msra.mxu1 %v5710_v8  ;;  %5358 = vmatprep.mubr.msk.f32.mxu1 %vm5950_vm0, %v5951_v11 }
  0x4d   : > { %5712 = vmatprep.subr.bf16.mxu1 %v5949_v3 }
  0x4e   : > { %5708 = vmatpush3.bf16.msra.mxu0 %v5707_v5 }
  0x4f   : > { %5361 = vmatprep.subr.mxu0 %v5951_v11 }
  0x50   : > { %5714 = vmatpush3.bf16.msra.mxu1 %v5713_v12 }
  0x51   : > { %5348 = vmatmul.mubr.msk.f32.vlgmr.msra.gmra.mrb[10].mxu0 %vm738_vm1, %v6160_v18  ;;  %5376 = vmatprep.subr.mxu1 %v5951_v11 }
  0x52   : > { %5363 = vmatprep.mubr.msk.f32.mxu0 %vm5950_vm0, %v5951_v11 }
  0x53   : > { %5359 = vmatmul.mubr.msk.f32.vlgmr.msra.gmra.mrb[10].mxu1 %vm738_vm1, %v6160_v18 }
  0x54   : > { %5378 = vmatprep.mubr.msk.f32.mxu1 %vm5950_vm0, %v5951_v11 }
  0xfc   : > { %v808_v13 = vpop.f32.mrb[0].mxu0 }
  0xfd   : > { %v5239_v14 = vpop.f32.mrb[1].mxu0  ;;  %v878_v15 = vpop.f32.mrb[0].mxu1  ;;  %v809_v31 = vadd.f32 %v4927_v25, %v808_v13 }
  0xfe   : > { %v5250_v16 = vpop.f32.mrb[1].mxu1  ;;  %v879_v35 = vadd.f32 %v4928_v32, %v878_v15 }
 0x104   : > { %v948_v17 = vpop.f32.mrb[2].mxu0 }
 0x105   : > { %v5261_v19 = vpop.f32.mrb[3].mxu0  ;;  %v1018_v20 = vpop.f32.mrb[2].mxu1  ;;  %v949_v44 = vadd.f32 %v4929_v37, %v948_v17 }
 0x106   : > { %v5272_v21 = vpop.f32.mrb[3].mxu1  ;;  %v1019_v45 = vadd.f32 %v4930_v41, %v1018_v20  ;;  %v4945_v41 = vld [vmem:[%s6981_s5 + $0xa] ss:$0 sm:$0xff] }
 0x10c   : > { %v1112_v23 = vpop.f32.mrb[4].mxu0 }
 0x10d   : > { %v1113_v26 = vadd.f32 %v4935_v22, %v1112_v23  ;;  %v5283_v27 = vpop.f32.mrb[5].mxu0  ;;  %v1182_v28 = vpop.f32.mrb[4].mxu1 }
 0x10e   : > { %v5294_v29 = vpop.f32.mrb[5].mxu1  ;;  %v1183_v30 = vadd.f32 %v4936_v24, %v1182_v28 }
 0x10f   : > { %5362 = vmatpush3.xpose.msk.msra.mxu0 %vm1630_vm2, %v1113_v26 }
 0x110   : > { %5366 = vmatprep.subr.mxu0 %v5951_v11 }
 0x112   : > { %5364 = vmatmul.mubr.msk.f32.vlgmr.msra.gmra.mrb[12].mxu0 %vm1630_vm2, %v809_v31 }
 0x113   : > { %5367 = vmatpush3.xpose.msk.msra.mxu0 %vm1630_vm2, %v1183_v30  ;;  %5368 = vmatprep.mubr.msk.f32.mxu0 %vm5950_vm0, %v5951_v11 }
 0x114   : > { %v1252_v36 = vpop.f32.mrb[6].mxu0  ;;  %5371 = vmatprep.subr.mxu0 %v5951_v11 }
 0x115   : > { %v1253_v38 = vadd.f32 %v4937_v33, %v1252_v36  ;;  %v1322_v39 = vpop.f32.mrb[6].mxu1  ;;  %v5305_v40 = vpop.f32.mrb[7].mxu0 }
 0x116   : > { %v1323_v42 = vadd.f32 %v4938_v34, %v1322_v39  ;;  %5369 = vmatmul.mubr.msk.f32.vlgmr.msra.gmra.mrb[14].mxu0 %vm1630_vm2, %v879_v35  ;;  %v5316_v43 = vpop.f32.mrb[7].mxu1 }
 0x117   : > { %5372 = vmatpush3.xpose.msk.msra.mxu0 %vm1630_vm2, %v1253_v38  ;;  %5373 = vmatprep.mubr.msk.f32.mxu0 %vm5950_vm0, %v5951_v11 }
 0x118   : > { %5377 = vmatpush3.xpose.msk.msra.mxu1 %vm1630_vm2, %v1323_v42  ;;  %5381 = vmatprep.subr.mxu0 %v5951_v11 }
 0x119   : > { %5386 = vmatprep.subr.mxu1 %v5951_v11 }
 0x11a   : > { %5374 = vmatmul.mubr.msk.f32.vlgmr.msra.gmra.mrb[16].mxu0 %vm1630_vm2, %v949_v44 }
 0x11b   : > { %5379 = vmatmul.mubr.msk.f32.vlgmr.msra.gmra.mrb[12].mxu1 %vm1630_vm2, %v1019_v45  ;;  %5383 = vmatprep.mubr.msk.f32.mxu0 %vm5950_vm0, %v5951_v11 }
 0x11c   : > { %5388 = vmatprep.mubr.msk.f32.mxu1 %vm5950_vm0, %v5951_v11  ;;  %v1416_v47 = vpop.f32.mrb[8].mxu0 }
 0x11d   : > { %v1417_v48 = vadd.f32 %v4943_v46, %v1416_v47  ;;  %v5327_v49 = vpop.f32.mrb[9].mxu0  ;;  %v4946_v46 = vld [vmem:[%s6981_s5 + $0xb] ss:$0 sm:$0xff] }
 0x11e   : > { %v1486_v51 = vpop.f32.mrb[8].mxu1 }
 0x11f   : > { %5382 = vmatpush3.msra.mxu0 %v1417_v48  ;;  %v1487_v52 = vadd.f32 %v4944_v50, %v1486_v51  ;;  %v5338_v54 = vpop.f32.mrb[9].mxu1 }
 0x120   : > { %5391 = vmatprep.subr.mxu0 %v5951_v11  ;;  %v708_v54 = vld [vmem:[%s6940_s6] sm:$0xff] }
 0x121   : > { %5387 = vmatpush3.msra.mxu1 %v1487_v52 }
 0x122   : > { %5396 = vmatprep.subr.mxu1 %v5951_v11 }
 0x124   : > { %v6391_v53 = vpop.f32.mrb[10].mxu0 }
 0x125   : > { %v5349_v55 = vpop.f32.mrb[11].mxu0  ;;  %v1557_v45 = vadd.f32 %v4945_v41, %v6391_v53 }
 0x126   : > { %v6394_v56 = vpop.f32.mrb[10].mxu1  ;;  %v709_v55 = vld [vmem:[%s6940_s6 + $0x8] sm:$0xff] }
 0x127   : > { %v5360_v57 = vpop.f32.mrb[11].mxu1  ;;  %v1627_v49 = vadd.f32 %v4946_v46, %v6394_v56  ;;  %v710_v56 = vld [vmem:[%s6940_s6 + $0x10] sm:$0xff] }
 0x1e5   : > { %v1703_v58 = vpop.f32.mrb[12].mxu0 }
 0x1e6   : > { %v1935_v60 = vmul.f32 0.35355338, %v1703_v58  ;;  %v5365_v61 = vpop.f32.mrb[13].mxu0 }
 0x1e8   : > { %v1939_v62 = vadd.f32 %v1935_v60, %v713_v59 }
 0x1e9   : > { %v1779_v63 = vpop.f32.mrb[14].mxu0 }
 0x1ea   : > { %v1936_v0 = vmul.f32 0.35355338, %v1779_v63  ;;  %v5370_v1 = vpop.f32.mrb[15].mxu0  ;;  %v1943_v2 = vsel %vm1630_vm2, %v1939_v62, -inf }
 0x1eb   : > { %1944 = vmax.xlane.f32.xlu0 %v1943_v2 }
 0x1ec   : > { %v1940_v4 = vadd.f32 %v1936_v0, %v713_v59 }
 0x1ed   : > { %v1855_v5 = vpop.f32.mrb[16].mxu0 }
 0x1ee   : > { %v1937_v6 = vmul.f32 0.35355338, %v1855_v5  ;;  %v1931_v7 = vpop.f32.mrb[12].mxu1  ;;  %v5375_v8 = vpop.f32.mrb[17].mxu0  ;;  %v1946_v9 = vsel %vm1630_vm2, %v1940_v4, -inf }
 0x1ef   : > { %v1938_v10 = vmul.f32 0.35355338, %v1931_v7  ;;  %v5380_v12 = vpop.f32.mrb[13].mxu1  ;;  %1947 = vmax.xlane.f32.xlu0 %v1946_v9 }
 0x1f0   : > { %v1941_v13 = vadd.f32 %v1937_v6, %v713_v59 }
 0x1f1   : > { %v1942_v15 = vadd.f32 %v1938_v10, %v713_v59  ;;  %v711_v59 = vld [vmem:[%s6940_s6 + $0x18] sm:$0xff] }
 0x1f2   : > { %v1949_v14 = vsel %vm1630_vm2, %v1941_v13, -inf }
 0x1f3   : > { %1950 = vmax.xlane.f32.xlu1 %v1949_v14  ;;  %v1952_v16 = vsel %vm1630_vm2, %v1942_v15, -inf }
 0x1f7   : > { %1953 = vmax.xlane.f32.xlu1 %v1952_v16  ;;  %v4967_v16 = vld [vmem:[%s6941_s7] ss:$0 sm:$0xff] }
 0x278   : > { %v1945_v17 = vpop.xlane.xlu0 %1944 }
 0x279   : > { %v1955_v19 = vsub.f32 %v1939_v62, %v1945_v17 }
 0x27b   : > { %v1959_v20 = vmul.f32 1.442695, %v1955_v19 }
 0x27c   : > { %v1948_v21 = vpop.xlane.xlu0 %1947 }
 0x27d   : > { %5847 = vpow2.f32 %v1959_v20  ;;  %v1956_v22 = vsub.f32 %v1940_v4, %v1948_v21 }
 0x27f   : > { %v1961_v23 = vmul.f32 1.442695, %v1956_v22 }
 0x280   : > { %v1951_v24 = vpop.xlane.xlu1 %1950 }
 0x281   : > { %5849 = vpow2.f32 %v1961_v23  ;;  %v1957_v25 = vsub.f32 %v1941_v13, %v1951_v24 }
 0x283   : > { %v1963_v26 = vmul.f32 1.442695, %v1957_v25 }
 0x284   : > { %v1954_v27 = vpop.xlane.xlu1 %1953 }
 0x285   : > { %5851 = vpow2.f32 %v1963_v26  ;;  %v1958_v28 = vsub.f32 %v1942_v15, %v1954_v27 }
 0x287   : > { %v5848_v29 = vpop.eup %5847  ;;  %v1965_v30 = vmul.f32 1.442695, %v1958_v28 }
 0x288   : > { %v1967_v31 = vsel %vm1630_vm2, %v5848_v29, 0.0 }
 0x289   : > { %5853 = vpow2.f32 %v1965_v30  ;;  %1968 = vadd.xlane.f32.xlu0 %v1967_v31  ;;  %v2617_v30 = vld [vmem:[%s6942_s8 + $0x8] sm:$0xff] }
 0x28b   : > { %v5850_v32 = vpop.eup %5849 }
 0x28c   : > { %v1970_v33 = vsel %vm1630_vm2, %v5850_v32, 0.0 }
 0x28d   : > { %1971 = vadd.xlane.f32.xlu1 %v1970_v33 }
 0x28f   : > { %v5852_v34 = vpop.eup %5851 }
 0x290   : > { %v1973_v35 = vsel %vm1630_vm2, %v5852_v34, 0.0 }
 0x291   : > { %1974 = vadd.xlane.f32.xlu0 %v1973_v35  ;;  %v2619_v35 = vld [vmem:[%s6942_s8 + $0x18] sm:$0xff] }
 0x293   : > { %v5854_v36 = vpop.eup %5853 }
 0x294   : > { %v1976_v37 = vsel %vm1630_vm2, %v5854_v36, 0.0 }
 0x295   : > { %1977 = vadd.xlane.f32.xlu1 %v1976_v37 }
 0x316   : > { %v1969_v38 = vpop.xlane.xlu0 %1968 }
 0x317   : > { %5855 = vrcp.f32 %v1969_v38  ;;  %v2623_v38 = vld [vmem:[%s6942_s8 + $0x38] sm:$0xff] }
 0x31a   : > { %v1972_v39 = vpop.xlane.xlu1 %1971 }
 0x31b   : > { %5857 = vrcp.f32 %v1972_v39 }
 0x31e   : > { %v1975_v40 = vpop.xlane.xlu0 %1974 }
 0x31f   : > { %5859 = vrcp.f32 %v1975_v40 }
 0x321   : > { %v5856_v42 = vpop.eup %5855 }
 0x322   : > { %v1983_v43 = vmul.f32 %v5856_v42, %v5848_v29  ;;  %v1978_v44 = vpop.xlane.xlu1 %1977  ;;  %v2616_v29 = vld [vmem:[%s6942_s8] sm:$0xff] }
 0x323   : > { %5861 = vrcp.f32 %v1978_v44  ;;  %v5716_v31 = vpack.c.bf16 %v2617_v30, %v2616_v29  ;;  %v4968_v44 = vld [vmem:[%s6952_s18] ss:$0 sm:$0xff] }
 0x324   : > { %5384 = vmatmul.mubr.msk.f32.vlgmr.msra.gmra.mrb[18].mxu0 %vm1630_vm2, %v1983_v43 }
 0x325   : > { %v5858_v47 = vpop.eup %5857  ;;  %5392 = vmatpush3.msra.mxu0 %v1557_v45  ;;  %5393 = vmatprep.mubr.msk.f32.mxu0 %vm5950_vm0, %v5951_v11  ;;  %v2624_v45 = vld [vmem:[%s6942_s8 + $0x40] sm:$0xff] }
 0x326   : > { %v1984_v48 = vmul.f32 %v5858_v47, %v5850_v32  ;;  %5401 = vmatprep.subr.mxu0 %v5951_v11  ;;  %v2621_v32 = vld [vmem:[%s6942_s8 + $0x28] sm:$0xff] }
 0x327   : > { %v2625_v47 = vld [vmem:[%s6942_s8 + $0x48] sm:$0xff] }
 0x328   : > { %5389 = vmatmul.mubr.msk.f32.vlgmr.msra.gmra.mrb[14].mxu1 %vm1630_vm2, %v1984_v48  ;;  %v2628_v48 = vld [vmem:[%s6942_s8 + $0x60] sm:$0xff] }
 0x329   : > { %v5860_v50 = vpop.eup %5859  ;;  %5397 = vmatpush3.msra.mxu1 %v1627_v49  ;;  %5398 = vmatprep.mubr.msk.f32.mxu1 %vm5950_vm0, %v5951_v11  ;;  %v2629_v49 = vld [vmem:[%s6942_s8 + $0x68] sm:$0xff] }
 0x32a   : > { %v1985_v51 = vmul.f32 %v5860_v50, %v5852_v34  ;;  %5406 = vmatprep.subr.mxu1 %v5951_v11  ;;  %v2618_v34 = vld [vmem:[%s6942_s8 + $0x10] sm:$0xff]  ;;  %v4969_v50 = vld [vmem:[%s6953_s19] ss:$0 sm:$0xff] }
 0x32b   : > { %v5719_v37 = vpack.c.bf16 %v2619_v35, %v2618_v34  ;;  %v4977_v34 = vld [vmem:[%s6944_s10 + $0xb8] sm:$0xff] }
 0x32c   : > { %5394 = vmatmul.mubr.msk.f32.vlgmr.msra.gmra.mrb[20].mxu0 %vm1630_vm2, %v1985_v51 }
 0x32d   : > { %v5862_v52 = vpop.eup %5861  ;;  %5403 = vmatprep.mubr.msk.f32.mxu0 %vm5950_vm0, %v5951_v11  ;;  %5402 = vmatpush3.msra.mxu0 %v708_v54  ;;  %v2626_v54 = vld [vmem:[%s6942_s8 + $0x50] sm:$0xff] }
 0x32e   : > { %v1986_v53 = vmul.f32 %v5862_v52, %v5854_v36  ;;  %5411 = vmatprep.subr.mxu0 %v5951_v11  ;;  %v2622_v36 = vld [vmem:[%s6942_s8 + $0x30] sm:$0xff]  ;;  %v5728_v52 = vpack.c.bf16 %v2625_v47, %v2624_v45 }
 0x32f   : > { %v5725_v39 = vpack.c.bf16 %v2623_v38, %v2622_v36  ;;  %v4978_v36 = vld [vmem:[%s6944_s10 + $0xc0] sm:$0xff] }
 0x330   : > { %5399 = vmatmul.mubr.msk.f32.vlgmr.msra.gmra.mrb[16].mxu1 %vm1630_vm2, %v1986_v53  ;;  %v5734_v53 = vpack.c.bf16 %v2629_v49, %v2628_v48 }
 0x331   : > { %5408 = vmatprep.mubr.msk.f32.mxu1 %vm5950_vm0, %v5951_v11  ;;  %5407 = vmatpush3.msra.mxu1 %v709_v55 }
 0x332   : > { %5416 = vmatprep.subr.mxu1 %v5951_v11 }
 0x3f7   : > { %v2056_v57 = vpop.f32.mrb[18].mxu0 }
 0x3f8   : > { %v5385_v58 = vpop.f32.mrb[19].mxu0  ;;  %5404 = vmatmul.mubr.msk.f32.vlgmr.msra.gmra.mrb[22].mxu0 %vm1630_vm2, %v2056_v57  ;;  %v2630_v57 = vld [vmem:[%s6942_s8 + $0x70] sm:$0xff] }
 0x3f9   : > { %5412 = vmatpush3.msra.mxu0 %v710_v56  ;;  %5413 = vmatprep.mubr.msk.f32.mxu0 %vm5950_vm0, %v5951_v11  ;;  %v2627_v56 = vld [vmem:[%s6942_s8 + $0x58] sm:$0xff] }
 0x3fa   : > { %5715 = vmatprep.subr.bf16.mxu0 %v5949_v3  ;;  %v2631_v58 = vld [vmem:[%s6942_s8 + $0x78] sm:$0xff] }
 0x3fb   : > { %v2129_v60 = vpop.f32.mrb[14].mxu1 }
 0x3fc   : > { %v5390_v61 = vpop.f32.mrb[15].mxu1  ;;  %5409 = vmatmul.mubr.msk.f32.vlgmr.msra.gmra.mrb[18].mxu1 %vm1630_vm2, %v2129_v60  ;;  %v5737_v60 = vpack.c.bf16 %v2631_v58, %v2630_v57  ;;  %v4998_v57 = vld [vmem:[%s6945_s11] ss:$0 sm:$0xff]  ;;  %v4999_v58 = vld [vmem:[%s6945_s11 + $0x1] ss:$0 sm:$0xff] }
 0x3fd   : > { %5417 = vmatpush3.msra.mxu1 %v711_v59  ;;  %5418 = vmatprep.mubr.msk.f32.mxu1 %vm5950_vm0, %v5951_v11  ;;  %v5731_v59 = vpack.c.bf16 %v2627_v56, %v2626_v54  ;;  %v2636_v61 = vld [vmem:[%s6944_s10] sm:$0xff] }
 0x3fe   : > { %5721 = vmatprep.subr.bf16.mxu1 %v5949_v3 }
 0x3ff   : > { %v2202_v62 = vpop.f32.mrb[20].mxu0 }
 0x400   : > { %v5395_v63 = vpop.f32.mrb[21].mxu0  ;;  %5414 = vmatmul.mubr.msk.f32.vlgmr.msra.gmra.mrb[24].mxu0 %vm1630_vm2, %v2202_v62  ;;  %v2637_v62 = vld [vmem:[%s6944_s10 + $0x8] sm:$0xff] }
 0x401   : > { %5429 = vmatprep.mubr.msk.f32.mxu0 %vm5950_vm0, %v5951_v11  ;;  %5717 = vmatpush3.bf16.msra.mxu0 %v5716_v31  ;;  %v2640_v63 = vld [vmem:[%s6944_s10 + $0x20] sm:$0xff]  ;;  %v4973_v31 = vld [vmem:[%s6944_s10 + $0x98] sm:$0xff] }
 0x402   : > { %5718 = vmatprep.subr.bf16.mxu0 %v5949_v3 }
 0x403   : > { %v2275_v0 = vpop.f32.mrb[16].mxu1 }
 0x404   : > { %v5400_v1 = vpop.f32.mrb[17].mxu1  ;;  %5419 = vmatmul.mubr.msk.f32.vlgmr.msra.gmra.mrb[20].mxu1 %vm1630_vm2, %v2275_v0  ;;  %v2641_v0 = vld [vmem:[%s6944_s10 + $0x28] sm:$0xff] }
 0x405   : > { %5440 = vmatprep.mubr.msk.f32.mxu1 %vm5950_vm0, %v5951_v11  ;;  %5720 = vmatpush3.bf16.msra.mxu0 %v5719_v37  ;;  %v5740_v1 = vpack.c.bf16 %v2637_v62, %v2636_v61  ;;  %v4979_v37 = vld [vmem:[%s6944_s10 + $0xc8] sm:$0xff]  ;;  %v4990_v61 = vld [vmem:[%s6943_s9] ss:$0 sm:$0xff]  ;;  %v4991_v62 = vld [vmem:[%s6943_s9 + $0x1] ss:$0 sm:$0xff] }
 0x406   : > { %5727 = vmatprep.subr.bf16.mxu0 %v5949_v3  ;;  %v5776_v38 = vpack.c.bf16 %v4979_v37, %v4978_v36 }
 0x4cb   : > { %v2348_v2 = vpop.f32.mrb[22].mxu0 }
 0x4cc   : > { %v5405_v4 = vpop.f32.mrb[23].mxu0  ;;  %v2571_v6 = vsel %vm738_vm1, %v2348_v2, 0.0  ;;  %v5746_v2 = vpack.c.bf16 %v2641_v0, %v2640_v63 }
 0x4cd   : > { %v2638_v4 = vld [vmem:[%s6944_s10 + $0x10] sm:$0xff] }
 0x4cf   : > { %v2421_v5 = vpop.f32.mrb[18].mxu1 }
 0x4d0   : > { %v2572_v7 = vsel %vm738_vm1, %v2421_v5, 0.0  ;;  %v5410_v8 = vpop.f32.mrb[19].mxu1  ;;  %v2639_v5 = vld [vmem:[%s6944_s10 + $0x18] sm:$0xff] }
 0x4d1   : > { %v2573_v9 = vadd.f32 %v2572_v7, %v2571_v6  ;;  %v2642_v6 = vld [vmem:[%s6944_s10 + $0x30] sm:$0xff]  ;;  %v2643_v7 = vld [vmem:[%s6944_s10 + $0x38] sm:$0xff]  ;;  %v5743_v8 = vpack.c.bf16 %v2639_v5, %v2638_v4 }
 0x4d3   : > { %v2494_v10 = vpop.f32.mrb[24].mxu0 }
 0x4d4   : > { %v2574_v12 = vsel %vm738_vm1, %v2494_v10, 0.0  ;;  %v5415_v13 = vpop.f32.mrb[25].mxu0  ;;  %v2644_v10 = vld [vmem:[%s6944_s10 + $0x40] sm:$0xff] }
 0x4d5   : > { %v2575_v14 = vadd.f32 %v2574_v12, %v2573_v9  ;;  %v5749_v9 = vpack.c.bf16 %v2643_v7, %v2642_v6  ;;  %v2645_v12 = vld [vmem:[%s6944_s10 + $0x48] sm:$0xff]  ;;  %v2648_v13 = vld [vmem:[%s6944_s10 + $0x60] sm:$0xff] }
 0x4d6   : > { %v5000_v6 = vld [vmem:[%s6945_s11 + $0x2] ss:$0 sm:$0xff]  ;;  %v5001_v7 = vld [vmem:[%s6945_s11 + $0x3] ss:$0 sm:$0xff] }
 0x4d7   : > { %v2567_v15 = vpop.f32.mrb[20].mxu1 }
 0x4d8   : > { %v2576_v17 = vsel %vm738_vm1, %v2567_v15, 0.0  ;;  %v5420_v19 = vpop.f32.mrb[21].mxu1  ;;  %v6590_v15 = vld [vmem:[%s637_s26] sm:$0xff]  ;;  %s4796_s26 = scalar_lea.sflag [#allocation3], %s631_s25 }
 0x4d9   : > { %v2577_v20 = vadd.f32 %v2576_v17, %v2575_v14  ;;  %v2649_v14 = vld [vmem:[%s6944_s10 + $0x68] sm:$0xff]  ;;  %v2646_v19 = vld [vmem:[%s6944_s10 + $0x50] sm:$0xff] }
 0x4da   : > { %v5758_v17 = vpack.c.bf16 %v2649_v14, %v2648_v13 }
 0x4db   : > { %v2584_v21 = vadd.f32 %v4967_v16, %v2577_v20  ;;  %v5752_v16 = vpack.c.bf16 %v2645_v12, %v2644_v10  ;;  %v2647_v20 = vld [vmem:[%s6944_s10 + $0x58] sm:$0xff]  ;;  %v4992_v10 = vld [vmem:[%s6943_s9 + $0x2] ss:$0 sm:$0xff]  ;;  %v4993_v12 = vld [vmem:[%s6943_s9 + $0x3] ss:$0 sm:$0xff] }
 0x4dd   : > { %v2585_v22 = vadd.f32 %v2584_v21, %v6160_v18  ;;  %v2620_v18 = vld [vmem:[%s6942_s8 + $0x20] sm:$0xff]  ;;  %v2650_v21 = vld [vmem:[%s6944_s10 + $0x70] sm:$0xff] }
 0x4de   : > { %v5722_v33 = vpack.c.bf16 %v2621_v32, %v2620_v18  ;;  %v4972_v18 = vld [vmem:[%s6944_s10 + $0x90] sm:$0xff] }
 0x4df   : > { %v2586_v23 = vsel %vm738_vm1, %v2585_v22, 0.0  ;;  %v4976_v32 = vld [vmem:[%s6944_s10 + $0xb0] sm:$0xff] }
 0x4e0   : > { %2587 = vadd.xlane.f32.xlu0 %v2586_v23  ;;  %5723 = vmatpush3.bf16.msra.mxu1 %v5722_v33  ;;  %v5755_v23 = vpack.c.bf16 %v2647_v20, %v2646_v19  ;;  %v5767_v33 = vpack.c.bf16 %v4973_v31, %v4972_v18  ;;  %v5773_v35 = vpack.c.bf16 %v4977_v34, %v4976_v32  ;;  %v5006_v20 = vld [vmem:[%s6945_s11 + $0x4] ss:$0 sm:$0xff] }
 0x4e1   : > { %5724 = vmatprep.subr.bf16.mxu1 %v5949_v3 }
 0x4e4   : > { %5726 = vmatpush3.bf16.msra.mxu1 %v5725_v39  ;;  %v4982_v39 = vld [vmem:[%s6944_s10 + $0xe0] sm:$0xff] }
 0x4e5   : > { %5733 = vmatprep.subr.bf16.mxu1 %v5949_v3 }
 0x56d   : > { %v2588_v24 = vpop.xlane.xlu0 %2587 }
 0x56e   : > { %v2590_v25 = vmul.f32 0.03125, %v2588_v24 }
 0x570   : > { %v2591_v26 = vsub.f32 %v2585_v22, %v2590_v25  ;;  %v2651_v22 = vld [vmem:[%s6944_s10 + $0x78] sm:$0xff]  ;;  %v4970_v25 = vld [vmem:[%s6944_s10 + $0x80] sm:$0xff] }
 0x571   : > { %v5761_v24 = vpack.c.bf16 %v2651_v22, %v2650_v21  ;;  %v5007_v21 = vld [vmem:[%s6945_s11 + $0x5] ss:$0 sm:$0xff] }
 0x572   : > { %v2592_v27 = vmul.f32 %v2591_v26, %v2591_v26 }
 0x574   : > { %v2593_v28 = vsel %vm738_vm1, %v2592_v27, 0.0  ;;  %v4974_v27 = vld [vmem:[%s6944_s10 + $0xa0] sm:$0xff] }
 0x575   : > { %2594 = vadd.xlane.f32.xlu1 %v2593_v28  ;;  %v4975_v28 = vld [vmem:[%s6944_s10 + $0xa8] sm:$0xff] }
 0x576   : > { %v5770_v30 = vpack.c.bf16 %v4975_v28, %v4974_v27 }
 0x602   : > { %v2595_v40 = vpop.xlane.xlu1 %2594 }
 0x603   : > { %v2596_v41 = vmul.f32 0.03125, %v2595_v40  ;;  %v4983_v40 = vld [vmem:[%s6944_s10 + $0xe8] sm:$0xff] }
 0x605   : > { %v2597_v42 = vadd.f32 1e-05, %v2596_v41  ;;  %v5782_v41 = vpack.c.bf16 %v4983_v40, %v4982_v39 }
 0x607   : > { %5863 = vrsqrt.f32 %v2597_v42  ;;  %v4980_v42 = vld [vmem:[%s6944_s10 + $0xd0] sm:$0xff] }
 0x611   : > { %v5864_v43 = vpop.eup %5863 }
 0x612   : > { %v2600_v46 = vmul.f32 %v5864_v43, %v2591_v26  ;;  %v4971_v26 = vld [vmem:[%s6944_s10 + $0x88] sm:$0xff]  ;;  %v4981_v43 = vld [vmem:[%s6944_s10 + $0xd8] sm:$0xff] }
 0x613   : > { %v5764_v29 = vpack.c.bf16 %v4971_v26, %v4970_v25  ;;  %v5779_v45 = vpack.c.bf16 %v4981_v43, %v4980_v42 }
 0x614   : > { %v2607_v51 = vmul.f32 %v4968_v44, %v2600_v46  ;;  %v4984_v44 = vld [vmem:[%s6944_s10 + $0xf0] sm:$0xff]  ;;  %v4985_v46 = vld [vmem:[%s6944_s10 + $0xf8] sm:$0xff] }
 0x615   : > { %v5785_v47 = vpack.c.bf16 %v4985_v46, %v4984_v44 }
 0x616   : > { %v6516_v55 = vadd.f32 %v4969_v50, %v2607_v51 }
 0x618   : > { %5430 = vmatmul.mubr.msk.f32.vlgmr.msra.gmra.mrb[26].mxu0 %vm738_vm1, %v6516_v55  ;;  %5441 = vmatmul.mubr.msk.f32.vlgmr.msra.gmra.mrb[22].mxu1 %vm738_vm1, %v6516_v55 }
 0x619   : > { %5729 = vmatpush3.bf16.msra.mxu0 %v5728_v52  ;;  %5735 = vmatpush3.bf16.msra.mxu1 %v5734_v53 }
 0x61a   : > { %5730 = vmatprep.subr.bf16.mxu0 %v5949_v3  ;;  %5736 = vmatprep.subr.bf16.mxu1 %v5949_v3 }
 0x61b   : > { %5451 = vmatprep.mubr.msk.f32.mxu0 %vm5950_vm0, %v5951_v11  ;;  %5462 = vmatprep.mubr.msk.f32.mxu1 %vm5950_vm0, %v5951_v11 }
 0x61d   : > { %5732 = vmatpush3.bf16.msra.mxu0 %v5731_v59  ;;  %5738 = vmatpush3.bf16.msra.mxu1 %v5737_v60 }
 0x61e   : > { %5739 = vmatprep.subr.bf16.mxu0 %v5949_v3  ;;  %5745 = vmatprep.subr.bf16.mxu1 %v5949_v3 }
 0x620   : > { %5452 = vmatmul.mubr.msk.f32.vlgmr.msra.gmra.mrb[28].mxu0 %vm738_vm1, %v6516_v55  ;;  %5463 = vmatmul.mubr.msk.f32.vlgmr.msra.gmra.mrb[24].mxu1 %vm738_vm1, %v6516_v55 }
 0x621   : > { %5741 = vmatpush3.bf16.msra.mxu0 %v5740_v1  ;;  %5747 = vmatpush3.bf16.msra.mxu1 %v5746_v2 }
 0x622   : > { %5742 = vmatprep.subr.bf16.mxu0 %v5949_v3  ;;  %5748 = vmatprep.subr.bf16.mxu1 %v5949_v3 }
 0x623   : > { %5473 = vmatprep.mubr.msk.f32.mxu0 %vm5950_vm0, %v5951_v11  ;;  %5484 = vmatprep.mubr.msk.f32.mxu1 %vm5950_vm0, %v5951_v11 }
 0x625   : > { %5744 = vmatpush3.bf16.msra.mxu0 %v5743_v8  ;;  %5750 = vmatpush3.bf16.msra.mxu1 %v5749_v9 }
 0x626   : > { %5751 = vmatprep.subr.bf16.mxu0 %v5949_v3  ;;  %5757 = vmatprep.subr.bf16.mxu1 %v5949_v3 }
 0x628   : > { %5474 = vmatmul.mubr.msk.f32.vlgmr.msra.gmra.mrb[30].mxu0 %vm738_vm1, %v6590_v15  ;;  %5485 = vmatmul.mubr.msk.f32.vlgmr.msra.gmra.mrb[26].mxu1 %vm738_vm1, %v6590_v15 }
 0x629   : > { %5753 = vmatpush3.bf16.msra.mxu0 %v5752_v16  ;;  %5759 = vmatpush3.bf16.msra.mxu1 %v5758_v17 }
 0x62a   : > { %5754 = vmatprep.subr.bf16.mxu0 %v5949_v3  ;;  %5760 = vmatprep.subr.bf16.mxu1 %v5949_v3 }
 0x62b   : > { %5495 = vmatprep.mubr.msk.f32.mxu0 %vm5950_vm0, %v5951_v11  ;;  %5506 = vmatprep.mubr.msk.f32.mxu1 %vm5950_vm0, %v5951_v11 }
 0x62d   : > { %5756 = vmatpush3.bf16.msra.mxu0 %v5755_v23  ;;  %5762 = vmatpush3.bf16.msra.mxu1 %v5761_v24 }
 0x62e   : > { %5763 = vmatprep.subr.bf16.mxu0 %v5949_v3  ;;  %5769 = vmatprep.subr.bf16.mxu1 %v5949_v3 }
 0x630   : > { %5496 = vmatmul.mubr.msk.f32.vlgmr.msra.gmra.mrb[32].mxu0 %vm738_vm1, %v6590_v15  ;;  %5507 = vmatmul.mubr.msk.f32.vlgmr.msra.gmra.mrb[28].mxu1 %vm738_vm1, %v6590_v15 }
 0x631   : > { %5765 = vmatpush3.bf16.msra.mxu0 %v5764_v29  ;;  %5771 = vmatpush3.bf16.msra.mxu1 %v5770_v30 }
 0x632   : > { %5766 = vmatprep.subr.bf16.mxu0 %v5949_v3  ;;  %5772 = vmatprep.subr.bf16.mxu1 %v5949_v3 }
 0x633   : > { %5517 = vmatprep.mubr.msk.f32.mxu0 %vm5950_vm0, %v5951_v11  ;;  %5528 = vmatprep.mubr.msk.f32.mxu1 %vm5950_vm0, %v5951_v11 }
 0x635   : > { %5768 = vmatpush3.bf16.msra.mxu0 %v5767_v33  ;;  %5774 = vmatpush3.bf16.msra.mxu1 %v5773_v35  ;;  %v2683_v33 = vld [vmem:[%s6985_s28] sm:$0xff] }
 0x636   : > { %5775 = vmatprep.subr.bf16.mxu0 %v5949_v3  ;;  %5781 = vmatprep.subr.bf16.mxu1 %v5949_v3 }
 0x638   : > { %5518 = vmatmul.mubr.msk.f32.vlgmr.msra.gmra.mrb[34].mxu0 %vm738_vm1, %v6590_v15  ;;  %5529 = vmatmul.mubr.msk.f32.vlgmr.msra.gmra.mrb[30].mxu1 %vm738_vm1, %v6590_v15 }
 0x639   : > { %5777 = vmatpush3.bf16.msra.mxu0 %v5776_v38  ;;  %5783 = vmatpush3.bf16.msra.mxu1 %v5782_v41 }
 0x63a   : > { %5778 = vmatprep.subr.bf16.mxu0 %v5949_v3  ;;  %5784 = vmatprep.subr.bf16.mxu1 %v5949_v3 }
 0x63b   : > { %5539 = vmatprep.mubr.msk.f32.mxu0 %vm5950_vm0, %v5951_v11  ;;  %5550 = vmatprep.mubr.msk.f32.mxu1 %vm5950_vm0, %v5951_v11 }
 0x63d   : > { %5780 = vmatpush3.bf16.msra.mxu0 %v5779_v45  ;;  %5786 = vmatpush3.bf16.msra.mxu1 %v5785_v47 }
 0x63e   : > { %5553 = vmatprep.subr.mxu0 %v5951_v11  ;;  %5558 = vmatprep.subr.mxu1 %v5951_v11 }
 0x640   : > { %5540 = vmatmul.mubr.msk.f32.vlgmr.msra.gmra.mrb[36].mxu0 %vm738_vm1, %v6590_v15  ;;  %5551 = vmatmul.mubr.msk.f32.vlgmr.msra.gmra.mrb[32].mxu1 %vm738_vm1, %v6590_v15 }
 0x641   : > { %5555 = vmatprep.mubr.msk.f32.mxu0 %vm5950_vm0, %v5951_v11  ;;  %5560 = vmatprep.mubr.msk.f32.mxu1 %vm5950_vm0, %v5951_v11 }
 0x6eb   : > { %v2777_v48 = vpop.f32.mrb[26].mxu0  ;;  %v2847_v49 = vpop.f32.mrb[22].mxu1 }
 0x6ec   : > { %v5431_v50 = vpop.f32.mrb[27].mxu0  ;;  %v5442_v51 = vpop.f32.mrb[23].mxu1  ;;  %v2778_v4 = vadd.f32 %v4990_v61, %v2777_v48  ;;  %v2848_v5 = vadd.f32 %v4991_v62, %v2847_v49 }
 0x6f3   : > { %v2917_v52 = vpop.f32.mrb[28].mxu0  ;;  %v2987_v53 = vpop.f32.mrb[24].mxu1 }
 0x6f4   : > { %v5453_v54 = vpop.f32.mrb[29].mxu0  ;;  %v5464_v56 = vpop.f32.mrb[25].mxu1  ;;  %v2918_v17 = vadd.f32 %v4992_v10, %v2917_v52  ;;  %v2988_v19 = vadd.f32 %v4993_v12, %v2987_v53 }
 0x6fb   : > { %v3084_v59 = vpop.f32.mrb[30].mxu0  ;;  %v3154_v60 = vpop.f32.mrb[26].mxu1 }
 0x6fc   : > { %v3085_v63 = vadd.f32 %v4998_v57, %v3084_v59  ;;  %v3155_v0 = vadd.f32 %v4999_v58, %v3154_v60  ;;  %v5475_v1 = vpop.f32.mrb[31].mxu0  ;;  %v5486_v2 = vpop.f32.mrb[27].mxu1 }
 0x6fe   : > { %5554 = vmatpush3.xpose.msk.msra.mxu0 %vm1630_vm2, %v3085_v63  ;;  %5559 = vmatpush3.xpose.msk.msra.mxu1 %vm1630_vm2, %v3155_v0 }
 0x6ff   : > { %5563 = vmatprep.subr.mxu0 %v5951_v11  ;;  %5568 = vmatprep.subr.mxu1 %v5951_v11 }
 0x701   : > { %5556 = vmatmul.mubr.msk.f32.vlgmr.msra.gmra.mrb[38].mxu0 %vm1630_vm2, %v2778_v4  ;;  %5561 = vmatmul.mubr.msk.f32.vlgmr.msra.gmra.mrb[34].mxu1 %vm1630_vm2, %v2848_v5 }
 0x702   : > { %5565 = vmatprep.mubr.msk.f32.mxu0 %vm5950_vm0, %v5951_v11  ;;  %5570 = vmatprep.mubr.msk.f32.mxu1 %vm5950_vm0, %v5951_v11 }
 0x703   : > { %v3224_v8 = vpop.f32.mrb[32].mxu0  ;;  %v3294_v9 = vpop.f32.mrb[28].mxu1 }
 0x704   : > { %v3225_v13 = vadd.f32 %v5000_v6, %v3224_v8  ;;  %v3295_v14 = vadd.f32 %v5001_v7, %v3294_v9  ;;  %v5497_v15 = vpop.f32.mrb[33].mxu0  ;;  %v5508_v16 = vpop.f32.mrb[29].mxu1 }
 0x705   : > { %v5009_v15 = vld [vmem:[%s6945_s11 + $0x7] ss:$0 sm:$0xff] }
 0x706   : > { %5564 = vmatpush3.xpose.msk.msra.mxu0 %vm1630_vm2, %v3225_v13  ;;  %5569 = vmatpush3.xpose.msk.msra.mxu1 %vm1630_vm2, %v3295_v14 }
 0x707   : > { %5573 = vmatprep.subr.mxu0 %v5951_v11  ;;  %5578 = vmatprep.subr.mxu1 %v5951_v11 }
 0x709   : > { %5566 = vmatmul.mubr.msk.f32.vlgmr.msra.gmra.mrb[40].mxu0 %vm1630_vm2, %v2918_v17  ;;  %5571 = vmatmul.mubr.msk.f32.vlgmr.msra.gmra.mrb[36].mxu1 %vm1630_vm2, %v2988_v19  ;;  %v5008_v17 = vld [vmem:[%s6945_s11 + $0x6] ss:$0 sm:$0xff] }
 0x70a   : > { %5575 = vmatprep.mubr.msk.f32.mxu0 %vm5950_vm0, %v5951_v11  ;;  %5580 = vmatprep.mubr.msk.f32.mxu1 %vm5950_vm0, %v5951_v11 }
 0x70b   : > { %v3388_v22 = vpop.f32.mrb[34].mxu0  ;;  %v3458_v25 = vpop.f32.mrb[30].mxu1 }
 0x70c   : > { %v3389_v23 = vadd.f32 %v5006_v20, %v3388_v22  ;;  %v5519_v24 = vpop.f32.mrb[35].mxu0  ;;  %v3459_v26 = vadd.f32 %v5007_v21, %v3458_v25  ;;  %v5530_v27 = vpop.f32.mrb[31].mxu1 }
 0x70e   : > { %5574 = vmatpush3.msra.mxu0 %v3389_v23  ;;  %5579 = vmatpush3.msra.mxu1 %v3459_v26 }
 0x70f   : > { %5583 = vmatprep.subr.mxu0 %v5951_v11  ;;  %5588 = vmatprep.subr.mxu1 %v5951_v11 }
 0x713   : > { %v6750_v28 = vpop.f32.mrb[36].mxu0  ;;  %v6752_v29 = vpop.f32.mrb[32].mxu1 }
 0x714   : > { %v5541_v30 = vpop.f32.mrb[37].mxu0  ;;  %v5552_v18 = vpop.f32.mrb[33].mxu1  ;;  %v3599_v21 = vadd.f32 %v5009_v15, %v6752_v29  ;;  %v3529_v23 = vadd.f32 %v5008_v17, %v6750_v28  ;;  %v2678_v28 = vld [vmem:[%s6946_s12] sm:$0xff]  ;;  %v2679_v29 = vld [vmem:[%s6946_s12 + $0x8] sm:$0xff] }
 0x715   : > { %v2681_v30 = vld [vmem:[%s6946_s12 + $0x18] sm:$0xff] }
 0x7d4   : > { %v3674_v31 = vpop.f32.mrb[38].mxu0  ;;  %v3750_v32 = vpop.f32.mrb[34].mxu1 }
 0x7d5   : > { %v3906_v34 = vmul.f32 0.35355338, %v3674_v31  ;;  %v3907_v35 = vmul.f32 0.35355338, %v3750_v32  ;;  %v5557_v36 = vpop.f32.mrb[39].mxu0  ;;  %v5562_v37 = vpop.f32.mrb[35].mxu1 }
 0x7d6   : > { %v2680_v31 = vld [vmem:[%s6946_s12 + $0x10] sm:$0xff] }
 0x7d7   : > { %v3911_v38 = vadd.f32 %v3907_v35, %v2683_v33  ;;  %v3910_v39 = vadd.f32 %v3906_v34, %v2683_v33 }
 0x7d9   : > { %v3917_v40 = vsel %vm1630_vm2, %v3911_v38, -inf  ;;  %v3914_v41 = vsel %vm1630_vm2, %v3910_v39, -inf }
 0x7da   : > { %3918 = vmax.xlane.f32.xlu1 %v3917_v40  ;;  %3915 = vmax.xlane.f32.xlu0 %v3914_v41 }
 0x7dc   : > { %v3826_v42 = vpop.f32.mrb[40].mxu0  ;;  %v3902_v43 = vpop.f32.mrb[36].mxu1 }
 0x7dd   : > { %v3908_v44 = vmul.f32 0.35355338, %v3826_v42  ;;  %v3909_v45 = vmul.f32 0.35355338, %v3902_v43  ;;  %v5567_v46 = vpop.f32.mrb[41].mxu0  ;;  %v5572_v47 = vpop.f32.mrb[37].mxu1 }
 0x7df   : > { %v3913_v48 = vadd.f32 %v3909_v45, %v2683_v33  ;;  %v3912_v49 = vadd.f32 %v3908_v44, %v2683_v33 }
 0x7e1   : > { %v3923_v50 = vsel %vm1630_vm2, %v3913_v48, -inf  ;;  %v3920_v51 = vsel %vm1630_vm2, %v3912_v49, -inf }
 0x7e2   : > { %3924 = vmax.xlane.f32.xlu1 %v3923_v50  ;;  %3921 = vmax.xlane.f32.xlu0 %v3920_v51 }
 0x867   : > { %v3919_v52 = vpop.xlane.xlu1 %3918  ;;  %v3916_v53 = vpop.xlane.xlu0 %3915 }
 0x868   : > { %v3927_v54 = vsub.f32 %v3911_v38, %v3919_v52  ;;  %v3926_v56 = vsub.f32 %v3910_v39, %v3916_v53 }
 0x86a   : > { %v3932_v57 = vmul.f32 1.442695, %v3927_v54  ;;  %v3930_v58 = vmul.f32 1.442695, %v3926_v56 }
 0x86c   : > { %5865 = vpow2.f32 %v3932_v57 }
 0x86d   : > { %5867 = vpow2.f32 %v3930_v58 }
 0x86f   : > { %v3925_v59 = vpop.xlane.xlu1 %3924  ;;  %v3922_v60 = vpop.xlane.xlu0 %3921 }
 0x870   : > { %v3929_v61 = vsub.f32 %v3913_v48, %v3925_v59  ;;  %v3928_v62 = vsub.f32 %v3912_v49, %v3922_v60 }
 0x872   : > { %v3936_v63 = vmul.f32 1.442695, %v3929_v61  ;;  %v3934_v0 = vmul.f32 1.442695, %v3928_v62 }
 0x874   : > { %5869 = vpow2.f32 %v3936_v63  ;;  %v4588_v63 = vld [vmem:[%s6948_s14] sm:$0xff] }
 0x875   : > { %5871 = vpow2.f32 %v3934_v0  ;;  %v4589_v0 = vld [vmem:[%s6948_s14 + $0x8] sm:$0xff] }
 0x876   : > { %v5866_v1 = vpop.eup %5865 }
 0x877   : > { %v5868_v2 = vpop.eup %5867  ;;  %v3941_v4 = vsel %vm1630_vm2, %v5866_v1, 0.0 }
 0x878   : > { %3942 = vadd.xlane.f32.xlu1 %v3941_v4  ;;  %v3938_v5 = vsel %vm1630_vm2, %v5868_v2, 0.0 }
 0x879   : > { %3939 = vadd.xlane.f32.xlu0 %v3938_v5  ;;  %v4673_v5 = vld [vmem:[%s6950_s16] sm:$0xff] }
 0x87e   : > { %v5870_v6 = vpop.eup %5869 }
 0x87f   : > { %v5872_v7 = vpop.eup %5871  ;;  %v3947_v8 = vsel %vm1630_vm2, %v5870_v6, 0.0 }
 0x880   : > { %3948 = vadd.xlane.f32.xlu1 %v3947_v8  ;;  %v3944_v9 = vsel %vm1630_vm2, %v5872_v7, 0.0 }
 0x881   : > { %3945 = vadd.xlane.f32.xlu0 %v3944_v9  ;;  %v4676_v9 = vld [vmem:[%s6950_s16 + $0x18] sm:$0xff] }
 0x905   : > { %v3943_v10 = vpop.xlane.xlu1 %3942 }
 0x906   : > { %5873 = vrcp.f32 %v3943_v10  ;;  %v3940_v12 = vpop.xlane.xlu0 %3939 }
 0x907   : > { %5875 = vrcp.f32 %v3940_v12  ;;  %v4677_v12 = vld [vmem:[%s6950_s16 + $0x20] sm:$0xff] }
 0x90d   : > { %v3949_v13 = vpop.xlane.xlu1 %3948 }
 0x90e   : > { %5877 = vrcp.f32 %v3949_v13  ;;  %v3946_v14 = vpop.xlane.xlu0 %3945  ;;  %v4678_v13 = vld [vmem:[%s6950_s16 + $0x28] sm:$0xff] }
 0x90f   : > { %5879 = vrcp.f32 %v3946_v14  ;;  %v5800_v14 = vpack.c.bf16 %v4678_v13, %v4677_v12 }
 0x910   : > { %v5874_v16 = vpop.eup %5873 }
 0x911   : > { %v5876_v19 = vpop.eup %5875  ;;  %v3955_v20 = vmul.f32 %v5874_v16, %v5866_v1  ;;  %v5788_v1 = vpack.c.bf16 %v4589_v0, %v4588_v63 }
 0x912   : > { %v3954_v22 = vmul.f32 %v5876_v19, %v5868_v2  ;;  %v4591_v2 = vld [vmem:[%s6948_s14 + $0x18] sm:$0xff] }
 0x913   : > { %5581 = vmatmul.mubr.msk.f32.vlgmr.msra.gmra.mrb[38].mxu1 %vm1630_vm2, %v3955_v20  ;;  %v5032_v20 = vld [vmem:[%s6952_s18 + $0x1] ss:$0 sm:$0xff] }
 0x914   : > { %5576 = vmatmul.mubr.msk.f32.vlgmr.msra.gmra.mrb[42].mxu0 %vm1630_vm2, %v3954_v22  ;;  %5589 = vmatpush3.msra.mxu1 %v3599_v21  ;;  %v5034_v22 = vld [vmem:[%s6953_s19 + $0x1] ss:$0 sm:$0xff] }
 0x915   : > { %5584 = vmatpush3.msra.mxu0 %v3529_v23  ;;  %5585 = vmatprep.mubr.msk.f32.mxu0 %vm5950_vm0, %v5951_v11 }
 0x916   : > { %5590 = vmatprep.mubr.msk.f32.mxu1 %vm5950_vm0, %v5951_v11  ;;  %5593 = vmatprep.subr.mxu0 %v5951_v11 }
 0x917   : > { %5598 = vmatprep.subr.mxu1 %v5951_v11 }
 0x918   : > { %v5878_v24 = vpop.eup %5877 }
 0x919   : > { %v5880_v25 = vpop.eup %5879  ;;  %v3957_v26 = vmul.f32 %v5878_v24, %v5870_v6  ;;  %v4674_v6 = vld [vmem:[%s6950_s16 + $0x8] sm:$0xff] }
 0x91a   : > { %v3956_v27 = vmul.f32 %v5880_v25, %v5872_v7  ;;  %v4675_v7 = vld [vmem:[%s6950_s16 + $0x10] sm:$0xff]  ;;  %v5794_v8 = vpack.c.bf16 %v4674_v6, %v4673_v5  ;;  %v4680_v25 = vld [vmem:[%s6950_s16 + $0x38] sm:$0xff] }
 0x91b   : > { %5591 = vmatmul.mubr.msk.f32.vlgmr.msra.gmra.mrb[40].mxu1 %vm1630_vm2, %v3957_v26  ;;  %v5797_v10 = vpack.c.bf16 %v4676_v9, %v4675_v7 }
 0x91c   : > { %5586 = vmatmul.mubr.msk.f32.vlgmr.msra.gmra.mrb[44].mxu0 %vm1630_vm2, %v3956_v27  ;;  %5600 = vmatprep.mubr.msk.f32.mxu1 %vm5950_vm0, %v5951_v11  ;;  %v5035_v27 = vld [vmem:[%s6949_s15] ss:$0 sm:$0xff] }
 0x91d   : > { %5595 = vmatprep.mubr.msk.f32.mxu0 %vm5950_vm0, %v5951_v11  ;;  %5594 = vmatpush3.msra.mxu0 %v2678_v28 }
 0x91e   : > { %5599 = vmatpush3.msra.mxu1 %v2679_v29  ;;  %5603 = vmatprep.subr.mxu0 %v5951_v11 }
 0x91f   : > { %5608 = vmatprep.subr.mxu1 %v5951_v11 }
 0x9e6   : > { %v4100_v18 = vpop.f32.mrb[38].mxu1 }
 0x9e7   : > { %v4027_v32 = vpop.f32.mrb[42].mxu0  ;;  %v5582_v33 = vpop.f32.mrb[39].mxu1  ;;  %5601 = vmatmul.mubr.msk.f32.vlgmr.msra.gmra.mrb[42].mxu1 %vm1630_vm2, %v4100_v18 }
 0x9e8   : > { %v5577_v34 = vpop.f32.mrb[43].mxu0  ;;  %5596 = vmatmul.mubr.msk.f32.vlgmr.msra.gmra.mrb[46].mxu0 %vm1630_vm2, %v4027_v32  ;;  %5609 = vmatpush3.msra.mxu1 %v2681_v30 }
 0x9e9   : > { %5604 = vmatpush3.msra.mxu0 %v2680_v31  ;;  %5605 = vmatprep.mubr.msk.f32.mxu0 %vm5950_vm0, %v5951_v11  ;;  %v5037_v31 = vld [vmem:[%s6951_s17] ss:$0 sm:$0xff] }
 0x9ea   : > { %5610 = vmatprep.mubr.msk.f32.mxu1 %vm5950_vm0, %v5951_v11  ;;  %5787 = vmatprep.subr.bf16.mxu0 %v5949_v3 }
 0x9eb   : > { %5793 = vmatprep.subr.bf16.mxu1 %v5949_v3 }
 0x9ee   : > { %v4246_v35 = vpop.f32.mrb[40].mxu1 }
 0x9ef   : > { %v4173_v36 = vpop.f32.mrb[44].mxu0  ;;  %v5592_v37 = vpop.f32.mrb[41].mxu1  ;;  %5611 = vmatmul.mubr.msk.f32.vlgmr.msra.gmra.mrb[44].mxu1 %vm1630_vm2, %v4246_v35 }
 0x9f0   : > { %v5587_v38 = vpop.f32.mrb[45].mxu0  ;;  %5606 = vmatmul.mubr.msk.f32.vlgmr.msra.gmra.mrb[48].mxu0 %vm1630_vm2, %v4173_v36  ;;  %5640 = vmatprep.mubr.msk.f32.mxu1 %vm5950_vm0, %v5951_v11 }
 0x9f1   : > { %5621 = vmatprep.mubr.msk.f32.mxu0 %vm5950_vm0, %v5951_v11  ;;  %v5030_v11 = vld [vmem:[%s6947_s13] ss:$0 sm:$0xff]  ;;  %5789 = vmatpush3.bf16.msra.mxu0 %v5788_v1 }
 0x9f2   : > { %5790 = vmatprep.subr.bf16.mxu0 %v5949_v3  ;;  %5795 = vmatpush3.bf16.msra.mxu1 %v5794_v8 }
 0x9f3   : > { %5796 = vmatprep.subr.bf16.mxu1 %v5949_v3 }
 0x9f6   : > { %5798 = vmatpush3.bf16.msra.mxu1 %v5797_v10 }
 0x9f7   : > { %5799 = vmatprep.subr.bf16.mxu1 %v5949_v3 }
 0x9fa   : > { %5801 = vmatpush3.bf16.msra.mxu1 %v5800_v14 }
 0x9fb   : > { %5802 = vmatprep.subr.bf16.mxu1 %v5949_v3  ;;  %v4679_v3 = vld [vmem:[%s6950_s16 + $0x30] sm:$0xff] }
 0x9fc   : > { %v5803_v26 = vpack.c.bf16 %v4680_v25, %v4679_v3 }
 0x9fe   : > { %5804 = vmatpush3.bf16.msra.mxu1 %v5803_v26 }
 0xaba   : > { %v4392_v39 = vpop.f32.mrb[42].mxu1 }
 0xabb   : > { %v4319_v40 = vpop.f32.mrb[46].mxu0  ;;  %v4543_v41 = vsel %vm738_vm1, %v4392_v39, 0.0  ;;  %v5602_v42 = vpop.f32.mrb[43].mxu1 }
 0xabc   : > { %v4542_v43 = vsel %vm738_vm1, %v4319_v40, 0.0  ;;  %v5597_v44 = vpop.f32.mrb[47].mxu0 }
 0xabd   : > { %v4544_v45 = vadd.f32 %v4543_v41, %v4542_v43 }
 0xac2   : > { %v4538_v46 = vpop.f32.mrb[44].mxu1 }
 0xac3   : > { %v4465_v47 = vpop.f32.mrb[48].mxu0  ;;  %v5612_v48 = vpop.f32.mrb[45].mxu1  ;;  %v4547_v52 = vsel %vm738_vm1, %v4538_v46, 0.0  ;;  %v5040_v46 = vld [vmem:[%s6952_s18 + $0x2] ss:$0 sm:$0xff] }
 0xac4   : > { %v4545_v49 = vsel %vm738_vm1, %v4465_v47, 0.0  ;;  %v5607_v50 = vpop.f32.mrb[49].mxu0  ;;  %v5042_v48 = vld [vmem:[%s6953_s19 + $0x2] ss:$0 sm:$0xff] }
 0xac5   : > { %v4546_v51 = vadd.f32 %v4545_v49, %v4544_v45 }
 0xac7   : > { %v4548_v53 = vadd.f32 %v4547_v52, %v4546_v51 }
 0xac9   : > { %v4555_v54 = vadd.f32 %v5030_v11, %v4548_v53 }
 0xacb   : > { %v4556_v56 = vadd.f32 %v4555_v54, %v6516_v55  ;;  %v4590_v55 = vld [vmem:[%s6948_s14 + $0x10] sm:$0xff] }
 0xacc   : > { %v5791_v4 = vpack.c.bf16 %v4591_v2, %v4590_v55 }
 0xacd   : > { %v4557_v57 = vsel %vm738_vm1, %v4556_v56, 0.0 }
 0xace   : > { %4558 = vadd.xlane.f32.xlu0 %v4557_v57  ;;  %5792 = vmatpush3.bf16.msra.mxu0 %v5791_v4 }
 0xb5b   : > { %v4559_v58 = vpop.xlane.xlu0 %4558 }
 0xb5c   : > { %v4560_v59 = vmul.f32 0.03125, %v4559_v58 }
 0xb5e   : > { %v4561_v60 = vsub.f32 %v4556_v56, %v4560_v59 }
 0xb60   : > { %v4562_v61 = vmul.f32 %v4561_v60, %v4561_v60 }
 0xb62   : > { %v4563_v62 = vsel %vm738_vm1, %v4562_v61, 0.0 }
 0xb63   : > { %4564 = vadd.xlane.f32.xlu1 %v4563_v62 }
 0xbf0   : > { %v4565_v15 = vpop.xlane.xlu1 %4564 }
 0xbf1   : > { %v4566_v16 = vmul.f32 0.03125, %v4565_v15 }
 0xbf3   : > { %v4567_v17 = vadd.f32 1e-05, %v4566_v16 }
 0xbf5   : > { %5881 = vrsqrt.f32 %v4567_v17 }
 0xbff   : > { %v5882_v19 = vpop.eup %5881 }
 0xc00   : > { %v4571_v21 = vmul.f32 %v5882_v19, %v4561_v60 }
 0xc02   : > { %v4578_v23 = vmul.f32 %v5032_v20, %v4571_v21 }
 0xc04   : > { %v4587_v24 = vadd.f32 %v5034_v22, %v4578_v23 }
 0xc06   : > { %5622 = vmatmul.mubr.msk.f32.vlgmr.msra.gmra.mrb[50].mxu0 %vm738_vm1, %v4587_v24 }
 0xcd9   : > { %v4668_v28 = vpop.f32.mrb[50].mxu0 }
 0xcda   : > { %v4669_v29 = vadd.f32 %v5035_v27, %v4668_v28  ;;  %v5623_v30 = vpop.f32.mrb[51].mxu0 }
 0xcdc   : > { %v4672_v18 = vmax.f32 %v4669_v29, 0.0 }
 0xcde   : > { %5641 = vmatmul.mubr.msk.f32.vlgmr.msra.gmra.mrb[46].mxu1 %vm4688_vm3, %v4672_v18 }
 0xdb1   : > { %v4758_v32 = vpop.f32.mrb[46].mxu1 }
 0xdb2   : > { %v4759_v33 = vadd.f32 %v5037_v31, %v4758_v32  ;;  %v5642_v34 = vpop.f32.mrb[47].mxu1 }
 0xdb4   : > { %v4762_v35 = vadd.f32 %v4759_v33, %v4587_v24 }
 0xdb6   : > { %v4763_v36 = vsel %vm738_vm1, %v4762_v35, 0.0 }
 0xdb7   : > { %4764 = vadd.xlane.f32.xlu0 %v4763_v36 }
 0xe44   : > { %v4765_v37 = vpop.xlane.xlu0 %4764 }
 0xe45   : > { %v4766_v38 = vmul.f32 0.03125, %v4765_v37 }
 0xe47   : > { %v4767_v39 = vsub.f32 %v4762_v35, %v4766_v38 }
 0xe49   : > { %v4768_v40 = vmul.f32 %v4767_v39, %v4767_v39 }
 0xe4b   : > { %v4769_v41 = vsel %vm738_vm1, %v4768_v40, 0.0 }
 0xe4c   : > { %4770 = vadd.xlane.f32.xlu1 %v4769_v41 }
 0xed9   : > { %v4771_v42 = vpop.xlane.xlu1 %4770 }
 0xeda   : > { %v4772_v43 = vmul.f32 0.03125, %v4771_v42 }
 0xedc   : > { %v4773_v44 = vadd.f32 1e-05, %v4772_v43 }
 0xede   : > { %5883 = vrsqrt.f32 %v4773_v44 }
 0xee8   : > { %v5884_v45 = vpop.eup %5883 }
 0xee9   : > { %v4777_v47 = vmul.f32 %v5884_v45, %v4767_v39 }
 0xeeb   : > { %v4784_v49 = vmul.f32 %v5040_v46, %v4777_v47 }
 0xeed   : > { %v4793_v50 = vadd.f32 %v5042_v48, %v4784_v49 }
 0xeef   : > { %4794 = vst.msk [vmem:[%s633_s1] sm:$0xff] %vm738_vm1, %v4793_v50 }
 0xef0   : > { %5898 = shalt.err (!%p5895_p3)
}
 0xef1   : > { %s5899_s25 = scalar_lea.hbm %s6891_s30, 128  ;;  %s5903_s1 = scalar_lea.hbm %s6986_s29, 256 }
 0xef2   : > { %p5900_p4 = scmp.ne.s32.totalorder %s6891_s30, %s5899_s25  ;;  %p5904_p9 = scmp.lt.u32.totalorder %s6891_s30, %s6986_s29 }
 0xef3   : > { %p5905_p10 = scmp.lt.u32.totalorder %s5903_s1, %s5899_s25  ;;  %p5907_p12 = scmp.lt.u32.totalorder %s5899_s25, %s6891_s30 }
 0xef4   : > { %p5901_p7 = pnand %p5900_p4, %p6096_p5 }
 0xef5   : > { %p5906_p11 = por %p5905_p10, %p5904_p9 }
 0xef6   : > { %p5902_p8 = pneg %p5901_p7 }
 0xef7   : > { %p5908_p13 = por %p5907_p12, %p5906_p11 }
 0xef9   : > { %p5909_p0 = pnand %p5908_p13, %p5902_p8 }
 0xefb   : > { %5912 = shalt.err (!%p5909_p0)
}
 0xefc   : > { %5805 = dma.vmem_to_hbm [thread:$0]  (%p6096_p5), %s6893_s23, 128, %s6891_s30, %s4796_s26  }
 0xefd PF: > { %s6987_s20 = sld [smem:[#allocation7_spill]]  ;;  %s6988_s2 = sld [smem:[#allocation5_spill]] }
 0xf03   : > { %p5811_p1 = scmp.ge.s32.totalorder %s6987_s20, 2  ;;  %s4821_s24 = sand.u32 1, %s6988_s2  }
 0xf04   : > { %s4822_s28 = scalar_lea.sflag [#allocation3], %s4821_s24 }
 0xf05   : > { %p5808_p2 = pnand %p5811_p1, %p6100_p6 }
 0xf07   : > { %5930 = dma.done.wait (!%p5808_p2), %s4822_s28, 128  }
 0xf08   : > { %5932 = vsyncadd (!%p5808_p2), %s4822_s28, 4294967168  ;;  %s6990_s24 = sld [smem:[#allocation8_spill]]  ;;  %s6991_s25 = sld [smem:[#allocation6_spill]] }
 0xf09   : > { %s6992_s23 = sld [smem:[#allocation9_spill]]  ;;  %s6993_s1 = smov %s5939_s22 }
 0xf0e   : > { %p30_p3 = scmp.ge.s32.totalorder %s6990_s24, 4   ;;  %s6994_s22 = smov %s6991_s25 }
 0xf10   :  { %32 = sbr.rel (!%p30_p3) target bundleno = 11 (0xb), region = 148 }
 0xf17   :  { %4827 = vsyncpa [#allocation3], 1 }
 0xf18   :  { %4829 = vsyncpa [#allocation3 + $0x1], 1 }

</bundles_post_ra>
